<compile_context>
chip_gen: v5e
topology: v5e:2x2
jax: 0.10.0
libtpu: 0.0.40
codegen_flags: <defaults>
</compile_context>

<pallas_src>
import functools

import jax
import jax.numpy as jnp
from jax import lax
from jax.experimental import pallas as pl
from jax.experimental.pallas import tpu as pltpu


# ----------------------------- Pallas kernel ---------------------------------
def _conv_bn_relu6_kernel(x_ref, w_ref, b_ref, o_ref, *, k, th, wo, cin_p):
    """One (batch, cout-tile, row-tile) grid step.

    x_ref: (Hp, Wp, Cin_p)   padded bf16 image  (VMEM-resident across ct / rt)
    w_ref: (K*K*Cin_p, TN)   BN-scale-folded bf16 weights (resident across rt)
    b_ref: (1, TN)           f32 BN bias for this Cout tile
    o_ref: (TH, Wo, TN)      bf16 output tile
    """
    rt = pl.program_id(2)
    r0 = rt * th
    if th % 8 == 0:
        r0 = pl.multiple_of(r0, 8)          # sublane-aligned dynamic row start
    tn = o_ref.shape[-1]

    # Build the (TH*Wo, K*K*Cin_p) patch operand from K*K shifted windows read
    # directly from the ref (offsets folded into the vld; halo columns skipped),
    # then ONE deep MXU contraction instead of 9 shallow dots + 9 acc RMWs.
    taps = []
    for kh in range(k):
        for kw in range(k):
            taps.append(x_ref[pl.ds(r0 + kh, th), pl.ds(kw, wo), :])
    patch = jnp.concatenate(taps, axis=-1).reshape(th * wo, k * k * cin_p)

    acc = jnp.dot(patch, w_ref[...], preferred_element_type=jnp.float32)
    y = acc + b_ref[...]                           # fused BatchNorm(eval) bias
    y = jnp.minimum(jnp.maximum(y, 0.0), 6.0)      # ReLU6 (f32 epilogue)
    o_ref[...] = y.reshape(th, wo, tn).astype(o_ref.dtype)


# ------------------------------ wrappers --------------------------------------
def _pick_row_tile(ho, wo, target_rows=1024):
    """Largest divisor TH of Ho with TH*Wo <= target_rows (TH=1 always valid)."""
    best = 1
    for th in range(1, ho + 1):
        if ho % th:
            continue
        if th * wo <= target_rows:
            best = th
        else:
            break
    return best


def conv_bn_relu_nhwc(x_nhwc, weight, gamma, beta, running_mean, running_var,
                      kernel_size=3, stride=1, groups=1, eps=1e-5):
    """Fused ConvBNReLU6, NHWC activations in / NHWC bf16 out (preferred path)."""
    if stride != 1:
        raise NotImplementedError("fused kernel implements stride=1 (module default)")
    if groups != 1:
        raise NotImplementedError("fused kernel implements groups=1 (module default)")

    k = kernel_size
    pad = (k - 1) // 2
    N, H, W, Cin = x_nhwc.shape
    Cout = weight.shape[0]
    Ho, Wo = H, W                                   # stride 1, "same" padding
    Hp, Wp = H + 2 * pad, W + 2 * pad

    # ---- BatchNorm(eval) fold:  BN(conv(x, w)) == conv(x, w*scale) + bias
    scale = gamma * lax.rsqrt(running_var + eps)              # (Cout,)
    bias = beta - running_mean * scale                        # (Cout,)
    w_folded = weight * scale[:, None, None, None]            # (Cout, Cin, K, K)

    # ---- channel padding: Cin -> sublane multiple, Cout -> lane multiple
    cin_p = max(8, ((Cin + 7) // 8) * 8)
    cout_pad = ((Cout + 127) // 128) * 128
    tn = 256 if cout_pad % 256 == 0 else 128

    x_pad = jnp.pad(x_nhwc.astype(jnp.bfloat16),
                    ((0, 0), (pad, pad), (pad, pad), (0, cin_p - Cin)))

    # weights -> (K*K*Cin_p, Cout_pad), row order = (kh, kw, c) matching the
    # kernel's tap-concatenation order
    w_t = jnp.transpose(w_folded, (2, 3, 1, 0))               # (K, K, Cin, Cout)
    w_t = jnp.pad(w_t, ((0, 0), (0, 0), (0, cin_p - Cin), (0, cout_pad - Cout)))
    w2 = w_t.reshape(k * k * cin_p, cout_pad).astype(jnp.bfloat16)
    bias2 = jnp.pad(bias, (0, cout_pad - Cout)).reshape(1, cout_pad).astype(jnp.float32)

    # ---- tiling / grid: (batch, cout-tiles, row-tiles); rt innermost so the
    # weight tile stays resident; the whole padded image is resident per batch.
    th = _pick_row_tile(Ho, Wo)
    rt_count = Ho // th
    ct_count = cout_pad // tn

    # ---- explicit VMEM budget from the actual buffers (2x headroom)
    img_b = Hp * Wp * cin_p * 2
    w_b = k * k * cin_p * tn * 2
    out_b = th * Wo * tn * 2
    bias_b = tn * 4
    patch_b = th * Wo * k * k * cin_p * 2
    acc_b = th * Wo * tn * 4
    vmem_needed = 2 * img_b + 2 * w_b + 2 * out_b + 2 * bias_b + patch_b + acc_b
    vmem_limit = int(min(100 * 2**20, max(2 * vmem_needed, 32 * 2**20)))

    cost = pl.CostEstimate(
        flops=2 * N * Ho * Wo * k * k * Cin * Cout,
        transcendentals=0,
        bytes_accessed=(N * Hp * Wp * cin_p * 2 + k * k * cin_p * cout_pad * 2
                        + cout_pad * 4 + N * Ho * Wo * cout_pad * 2))

    out = pl.pallas_call(
        functools.partial(_conv_bn_relu6_kernel, k=k, th=th, wo=Wo, cin_p=cin_p),
        out_shape=jax.ShapeDtypeStruct((N, Ho, Wo, cout_pad), jnp.bfloat16),
        grid_spec=pltpu.PrefetchScalarGridSpec(
            num_scalar_prefetch=0,
            grid=(N, ct_count, rt_count),
            in_specs=[
                # whole padded image; block index constant across (ct, rt) ->
                # DMA'd once per batch element, VMEM-resident afterwards.
                pl.BlockSpec((None, Hp, Wp, cin_p), lambda b, ct, rt: (b, 0, 0, 0)),
                # weight tile; constant across innermost rt -> resident.
                pl.BlockSpec((k * k * cin_p, tn), lambda b, ct, rt: (0, ct)),
                pl.BlockSpec((1, tn), lambda b, ct, rt: (0, ct)),
            ],
            out_specs=pl.BlockSpec((None, th, Wo, tn),
                                   lambda b, ct, rt: (b, rt, 0, ct)),
        ),
        compiler_params=pltpu.CompilerParams(
            dimension_semantics=("parallel", "parallel", "parallel"),
            vmem_limit_bytes=vmem_limit),
        cost_estimate=cost,
    )(x_pad, w2, bias2)

    return out[..., :Cout]                          # NHWC, bf16


@functools.partial(jax.jit, static_argnames=("kernel_size", "stride", "groups"))
def conv_bn_relu(x_nchw, weight, gamma, beta, running_mean, running_var,
                 kernel_size=3, stride=1, groups=1, eps=1e-5):
    """PyTorch-parity NCHW/f32 wrapper around the NHWC fused kernel.

    TODO(synk): chain layers through conv_bn_relu_nhwc (bf16 NHWC) to avoid the
    two full-activation transposes and the f32 upcast below.
    """
    x_nhwc = jnp.transpose(x_nchw, (0, 2, 3, 1))
    out = conv_bn_relu_nhwc(x_nhwc, weight, gamma, beta, running_mean,
                            running_var, kernel_size, stride, groups, eps)
    return jnp.transpose(out, (0, 3, 1, 2)).astype(jnp.float32)


# --------------------------------- main ---------------------------------------
if __name__ == "__main__":
    # Small shapes consistent with ConvBNReLU(in_planes=4, out_planes=8, k=3, s=1)
    N, Cin, H, W = 2, 4, 16, 16
    Cout, K, stride = 8, 3, 1

    key = jax.random.PRNGKey(0)
    k1, k2, k3, k4, k5, k6 = jax.random.split(key, 6)

    x = jax.random.normal(k1, (N, Cin, H, W), jnp.float32)
    weight = jax.random.normal(k2, (Cout, Cin, K, K), jnp.float32) * 0.1
    gamma = jax.random.normal(k3, (Cout,), jnp.float32) * 0.1 + 1.0
    beta = jax.random.normal(k4, (Cout,), jnp.float32) * 0.1
    running_mean = jax.random.normal(k5, (Cout,), jnp.float32) * 0.1
    running_var = jnp.abs(jax.random.normal(k6, (Cout,), jnp.float32)) * 0.5 + 0.5

    out = conv_bn_relu(x, weight, gamma, beta, running_mean, running_var,
                       kernel_size=K, stride=stride)
    out = jax.block_until_ready(out)
    assert out.shape == (N, Cout, H, W), out.shape

    # Reference: XLA conv with the same bf16-rounded, BN-folded operands the
    # kernel consumes (f32 accumulation) + bias + ReLU6.  Kernel emits bf16
    # output, so tolerances cover one bf16 rounding of the result.
    eps = 1e-5
    scale = gamma * jax.lax.rsqrt(running_var + eps)
    bias = beta - running_mean * scale
    w_folded = weight * scale[:, None, None, None]
    xq = x.astype(jnp.bfloat16).astype(jnp.float32)
    wq = w_folded.astype(jnp.bfloat16).astype(jnp.float32)
    ref = jax.lax.conv_general_dilated(
        xq, wq, window_strides=(stride, stride), padding=((1, 1), (1, 1)),
        dimension_numbers=("NCHW", "OIHW", "NCHW"))
    ref = ref + bias[None, :, None, None]
    ref = jnp.clip(ref, 0.0, 6.0)
    max_err = float(jnp.max(jnp.abs(out - ref)))
    assert jnp.allclose(out, ref, atol=5e-2, rtol=5e-2), f"mismatch: {max_err}"

    print("KERNEL_OK")
</pallas_src>

<mosaic_0001>
module attributes {stable_mosaic.version = 11 : i64} {
  func.func @_conv_bn_relu6_kernel(%arg0: i32, %arg1: i32, %arg2: i32, %arg3: memref<1x18x18x8xbf16, #tpu.memory_space<vmem>>, %arg4: memref<72x128xbf16, #tpu.memory_space<vmem>>, %arg5: memref<1x128xf32, #tpu.memory_space<vmem>>, %arg6: memref<1x16x16x128xbf16, #tpu.memory_space<vmem>>) attributes {dimension_semantics = [#tpu.dimension_semantics<parallel>, #tpu.dimension_semantics<parallel>, #tpu.dimension_semantics<parallel>], iteration_bounds = array<i64: 2, 1, 1>, scalar_prefetch = 0 : i64, scratch_operands = 0 : i64, tpu.core_type = #tpu.core_type<tc>, window_params = [{transform_indices = @transform_0, window_bounds = array<i64: 1, 18, 18, 8>}, {transform_indices = @transform_1, window_bounds = array<i64: 72, 128>}, {transform_indices = @transform_2, window_bounds = array<i64: 1, 128>}, {transform_indices = @transform_3, window_bounds = array<i64: 1, 16, 16, 128>}]} {
    %c16_i32 = arith.constant 16 : i32
    %0 = arith.muli %arg2, %c16_i32 : i32
    %1 = tpu.assume_multiple %0, 8 : i32
    %c0_i32 = arith.constant 0 : i32
    %2 = arith.addi %1, %c0_i32 : i32
    %c0 = arith.constant 0 : index
    %3 = arith.index_cast %2 : i32 to index
    %c0_0 = arith.constant 0 : index
    %c0_1 = arith.constant 0 : index
    %4 = vector.load %arg3[%c0, %3, %c0_0, %c0_1] : memref<1x18x18x8xbf16, #tpu.memory_space<vmem>>, vector<1x16x16x8xbf16>
    %5 = vector.shape_cast %4 : vector<1x16x16x8xbf16> to vector<16x16x8xbf16>
    %c0_i32_2 = arith.constant 0 : i32
    %6 = arith.addi %1, %c0_i32_2 : i32
    %c0_3 = arith.constant 0 : index
    %7 = arith.index_cast %6 : i32 to index
    %c1 = arith.constant 1 : index
    %c0_4 = arith.constant 0 : index
    %8 = vector.load %arg3[%c0_3, %7, %c1, %c0_4] : memref<1x18x18x8xbf16, #tpu.memory_space<vmem>>, vector<1x16x16x8xbf16>
    %9 = vector.shape_cast %8 : vector<1x16x16x8xbf16> to vector<16x16x8xbf16>
    %c0_i32_5 = arith.constant 0 : i32
    %10 = arith.addi %1, %c0_i32_5 : i32
    %c0_6 = arith.constant 0 : index
    %11 = arith.index_cast %10 : i32 to index
    %c2 = arith.constant 2 : index
    %c0_7 = arith.constant 0 : index
    %12 = vector.load %arg3[%c0_6, %11, %c2, %c0_7] : memref<1x18x18x8xbf16, #tpu.memory_space<vmem>>, vector<1x16x16x8xbf16>
    %13 = vector.shape_cast %12 : vector<1x16x16x8xbf16> to vector<16x16x8xbf16>
    %c1_i32 = arith.constant 1 : i32
    %14 = arith.addi %1, %c1_i32 : i32
    %c0_8 = arith.constant 0 : index
    %15 = arith.index_cast %14 : i32 to index
    %c0_9 = arith.constant 0 : index
    %c0_10 = arith.constant 0 : index
    %16 = vector.load %arg3[%c0_8, %15, %c0_9, %c0_10] : memref<1x18x18x8xbf16, #tpu.memory_space<vmem>>, vector<1x16x16x8xbf16>
    %17 = vector.shape_cast %16 : vector<1x16x16x8xbf16> to vector<16x16x8xbf16>
    %c1_i32_11 = arith.constant 1 : i32
    %18 = arith.addi %1, %c1_i32_11 : i32
    %c0_12 = arith.constant 0 : index
    %19 = arith.index_cast %18 : i32 to index
    %c1_13 = arith.constant 1 : index
    %c0_14 = arith.constant 0 : index
    %20 = vector.load %arg3[%c0_12, %19, %c1_13, %c0_14] : memref<1x18x18x8xbf16, #tpu.memory_space<vmem>>, vector<1x16x16x8xbf16>
    %21 = vector.shape_cast %20 : vector<1x16x16x8xbf16> to vector<16x16x8xbf16>
    %c1_i32_15 = arith.constant 1 : i32
    %22 = arith.addi %1, %c1_i32_15 : i32
    %c0_16 = arith.constant 0 : index
    %23 = arith.index_cast %22 : i32 to index
    %c2_17 = arith.constant 2 : index
    %c0_18 = arith.constant 0 : index
    %24 = vector.load %arg3[%c0_16, %23, %c2_17, %c0_18] : memref<1x18x18x8xbf16, #tpu.memory_space<vmem>>, vector<1x16x16x8xbf16>
    %25 = vector.shape_cast %24 : vector<1x16x16x8xbf16> to vector<16x16x8xbf16>
    %c2_i32 = arith.constant 2 : i32
    %26 = arith.addi %1, %c2_i32 : i32
    %c0_19 = arith.constant 0 : index
    %27 = arith.index_cast %26 : i32 to index
    %c0_20 = arith.constant 0 : index
    %c0_21 = arith.constant 0 : index
    %28 = vector.load %arg3[%c0_19, %27, %c0_20, %c0_21] : memref<1x18x18x8xbf16, #tpu.memory_space<vmem>>, vector<1x16x16x8xbf16>
    %29 = vector.shape_cast %28 : vector<1x16x16x8xbf16> to vector<16x16x8xbf16>
    %c2_i32_22 = arith.constant 2 : i32
    %30 = arith.addi %1, %c2_i32_22 : i32
    %c0_23 = arith.constant 0 : index
    %31 = arith.index_cast %30 : i32 to index
    %c1_24 = arith.constant 1 : index
    %c0_25 = arith.constant 0 : index
    %32 = vector.load %arg3[%c0_23, %31, %c1_24, %c0_25] : memref<1x18x18x8xbf16, #tpu.memory_space<vmem>>, vector<1x16x16x8xbf16>
    %33 = vector.shape_cast %32 : vector<1x16x16x8xbf16> to vector<16x16x8xbf16>
    %c2_i32_26 = arith.constant 2 : i32
    %34 = arith.addi %1, %c2_i32_26 : i32
    %c0_27 = arith.constant 0 : index
    %35 = arith.index_cast %34 : i32 to index
    %c2_28 = arith.constant 2 : index
    %c0_29 = arith.constant 0 : index
    %36 = vector.load %arg3[%c0_27, %35, %c2_28, %c0_29] : memref<1x18x18x8xbf16, #tpu.memory_space<vmem>>, vector<1x16x16x8xbf16>
    %37 = vector.shape_cast %36 : vector<1x16x16x8xbf16> to vector<16x16x8xbf16>
    %38 = tpu.concatenate %5, %9, %13, %17, %21, %25, %29, %33, %37 in 2 : vector<16x16x8xbf16>, vector<16x16x8xbf16>, vector<16x16x8xbf16>, vector<16x16x8xbf16>, vector<16x16x8xbf16>, vector<16x16x8xbf16>, vector<16x16x8xbf16>, vector<16x16x8xbf16>, vector<16x16x8xbf16> -> vector<16x16x72xbf16>
    %39 = vector.shape_cast %38 : vector<16x16x72xbf16> to vector<256x72xbf16>
    %c0_30 = arith.constant 0 : index
    %c0_31 = arith.constant 0 : index
    %40 = vector.load %arg4[%c0_30, %c0_31] : memref<72x128xbf16, #tpu.memory_space<vmem>>, vector<72x128xbf16>
    %cst = arith.constant dense<0.000000e+00> : vector<256x128xf32>
    %41 = tpu.matmul %39, %40, %cst {dimension_numbers = #tpu.dot_dimension_numbers<[1], [0], [0], [1], [0, 0, 1, 1], [], []>} : vector<256x72xbf16>, vector<72x128xbf16>, vector<256x128xf32> -> vector<256x128xf32>
    %c0_32 = arith.constant 0 : index
    %c0_33 = arith.constant 0 : index
    %42 = vector.load %arg5[%c0_32, %c0_33] : memref<1x128xf32, #tpu.memory_space<vmem>>, vector<1x128xf32>
    %43 = vector.broadcast %42 : vector<1x128xf32> to vector<256x128xf32>
    %44 = arith.addf %41, %43 : vector<256x128xf32>
    %cst_34 = arith.constant 0.000000e+00 : f32
    %45 = vector.broadcast %cst_34 : f32 to vector<256x128xf32>
    %46 = arith.maximumf %44, %45 : vector<256x128xf32>
    %cst_35 = arith.constant 6.000000e+00 : f32
    %47 = vector.broadcast %cst_35 : f32 to vector<256x128xf32>
    %48 = arith.minimumf %46, %47 : vector<256x128xf32>
    %49 = vector.shape_cast %48 : vector<256x128xf32> to vector<16x16x128xf32>
    %50 = arith.truncf %49 : vector<16x16x128xf32> to vector<16x16x128xbf16>
    %c0_36 = arith.constant 0 : index
    %c0_37 = arith.constant 0 : index
    %c0_38 = arith.constant 0 : index
    %c0_39 = arith.constant 0 : index
    %51 = vector.load %arg6[%c0_36, %c0_37, %c0_38, %c0_39] : memref<1x16x16x128xbf16, #tpu.memory_space<vmem>>, vector<1x16x16x128xbf16>
    %52 = vector.shape_cast %51 : vector<1x16x16x128xbf16> to vector<16x16x128xbf16>
    %53 = vector.shape_cast %50 : vector<16x16x128xbf16> to vector<1x16x16x128xbf16>
    tpu.vector_store %arg6[%c0_36, %c0_37, %c0_38, %c0_39], %53 {strides = array<i32>} : memref<1x16x16x128xbf16, #tpu.memory_space<vmem>>, vector<1x16x16x128xbf16>,
    return
  }
  func.func @transform_0(%arg0: i32, %arg1: i32, %arg2: i32) -> (i32, i32, i32, i32) {
    %c0_i32 = arith.constant 0 : i32
    %c0_i32_0 = arith.constant 0 : i32
    %c0_i32_1 = arith.constant 0 : i32
    %c0_i32_2 = arith.constant 0 : i32
    return %arg0, %c0_i32, %c0_i32_0, %c0_i32_1 : i32, i32, i32, i32
  }
  func.func @transform_1(%arg0: i32, %arg1: i32, %arg2: i32) -> (i32, i32) {
    %c0_i32 = arith.constant 0 : i32
    %c0_i32_0 = arith.constant 0 : i32
    return %c0_i32, %arg1 : i32, i32
  }
  func.func @transform_2(%arg0: i32, %arg1: i32, %arg2: i32) -> (i32, i32) {
    %c0_i32 = arith.constant 0 : i32
    %c0_i32_0 = arith.constant 0 : i32
    return %c0_i32, %arg1 : i32, i32
  }
  func.func @transform_3(%arg0: i32, %arg1: i32, %arg2: i32) -> (i32, i32, i32, i32) {
    %c0_i32 = arith.constant 0 : i32
    %c0_i32_0 = arith.constant 0 : i32
    return %arg0, %arg2, %c0_i32, %arg1 : i32, i32, i32, i32
  }
}

</mosaic_0001>

<bundles_post_ra>
// kernel: conv_bn_relu.1
= control target key start
LH: loop header
LB: loop body
LE: loop exit
PB: predicated region body
PF: predicated region fallthrough
CT: control target
= control target key end

     0   :  { %s3289_s12 = smov 0   ;;  %s3291_s13 = smov 0   ;;  %s4516_s0 = inlined_call_operand.vmem [shape: bf16[2,18,18,8], index: 0, kind: input, shape index: {}]   ;;  %s4517_s1 = inlined_call_operand.vmem [shape: bf16[72,128], index: 1, kind: input, shape index: {}]   ;;  %s4518_s2 = inlined_call_operand.vmem [shape: f32[1,128], index: 2, kind: input, shape index: {}]   ;;  %s4519_s3 = inlined_call_operand.vmem [shape: bf16[2,16,16,128], index: 3, kind: output, shape index: {}]  }
   0x1   :  { %s3293_s14 = smov 0  }
   0x2 LB: > { %s32_s15 = sadd.s32 1, %s3255_s13  ;;  %p2654_p0 = scmp.ge.s32.totalorder %s3259_s14, 1  ;;  %s3259_s14 = sphi %s3293_s14, %s13_s14   ;;  %s3255_s13 = sphi %s3291_s13, %s4527_s13   ;;  %s3251_s12 = sphi %s3289_s12, %s4526_s12  }
   0x3   : > { %p34_p1 = scmp.ge.s32.totalorder %s32_s15, 2  ;;  %p177_p2 = scmp.lt.s32.totalorder %s3259_s14, 3 }
   0x5   : > { %s4529_s15 = smov (%p34_p1, %s32_s15), 0  ;;  %p178_p3 = pnand %p2654_p0, %p177_p2 }
   0x7   : > { %181 = sbr.rel (%p178_p3) target bundleno = 625 (0x271), region = 32 }
   0xc   : > { %p216_p4 = scmp.lt.s32.totalorder %s3251_s12, 1  ;;  %vm575_vm0 = vsmask.f32 7424  ;;  %s3261_s20 = smov 8   ;;  %vm848_vm1 = vcmask 1046528   ;;  %vm1953_vm2 = vcmask 64512  }
   0xd   : > { %s3262_s21 = smov 16   ;;  %s3263_s22 = smov 24   ;;  %vm1986_vm3 = vcmask 130048   ;;  %vm2019_vm4 = vcmask 195584   ;;  %vm2290_vm5 = vcmask 1043456   ;;  %vm2052_vm6 = vcmask 261120  }
   0xe   : > { %s4531_s12 = smov (!%p216_p4, %s3251_s12), 1  ;;  %s3264_s23 = smov 40   ;;  %vm2085_vm7 = vcmask 326656   ;;  %vm2118_vm8 = vcmask 392192   ;;  %vm2151_vm9 = vcmask 457728   ;;  %vm2184_vm10 = vcmask 523264  }
   0xf   : > { %s3126_s16 = smul.u32 216, %s4531_s12  ;;  %s3265_s24 = smov 32   ;;  %vm2257_vm11 = vcmask 588800  }
  0x10   : > { %s3266_s25 = smov 48   ;;  %s3267_s26 = smov 64  }
  0x11   : > { %s3313_s19 = scalar_lea.vmem %s4516_s0, %s3126_s16  ;;  %s3268_s27 = smov 56  }
  0x12   : > { %v3316_v0 = vld [vmem:[%s3313_s19 + $0x30] sm:$0xff]   ;;  %v283_v1 = vld [vmem:[%s3313_s19 + $0x38] sm:$0x1]  ;;  %v281_v6 = vld [vmem:[%s3313_s19 + $0x20] sm:$0x1]  ;;  %s2820_s17 = sshll.u32 %s4531_s12, 7 }
  0x13   : > { %v3320_v2 = vld [vmem:[%s3313_s19 + $0x18] sm:$0xff]   ;;  %v547_v3 = vunpack.c.l.b16 %v283_v1  ;;  %v625_v4 = vshrl.u32 %v3316_v0, 16  ;;  %v627_v5 = vshll.u32 %v3316_v0, 16  ;;  %v2826_v8 = vld [vmem:[%s3313_s19] sm:$0xff]   ;;  %v545_v9 = vunpack.c.l.b16 %v281_v6  ;;  %v279_v11 = vld [vmem:[%s3313_s19 + $0x8] sm:$0x1] }
  0x14   : > { %v601_v7 = vshrl.u32 %v3320_v2, 16  ;;  %v603_v10 = vshll.u32 %v3320_v2, 16  ;;  %v577_v12 = vshrl.u32 %v2826_v8, 16  ;;  %v579_v13 = vshll.u32 %v2826_v8, 16  ;;  %v3330_v14 = vld [vmem:[%s3313_s19 + $0x60] sm:$0xff]   ;;  %v3360_v42 = vld [vmem:[%s3313_s19 + $0x48] sm:$0xff]  }
  0x15   : > { %v3332_v15 = vpack.c.b16 %v547_v3, %v547_v3  ;;  %v629_v16 = vrot.slane %v627_v5, 1  ;;  %v543_v17 = vunpack.c.l.b16 %v279_v11  ;;  %v287_v18 = vld [vmem:[%s3313_s19 + $0x68] sm:$0x1]  ;;  %v673_v19 = vshrl.u32 %v3330_v14, 16  ;;  %v282_v30 = vld [vmem:[%s3313_s19 + $0x2c] sm:$0x1] }
  0x16   : > { %v3336_v20 = vpack.c.b16 %v545_v9, %v545_v9  ;;  %v605_v21 = vrot.slane %v603_v10, 1  ;;  %v581_v22 = vrot.slane %v579_v13, 1  ;;  %v551_v23 = vunpack.c.l.b16 %v287_v18  ;;  %v3339_v24 = vld [vmem:[%s3313_s19 + $0x24] sm:$0xff]   ;;  %v285_v35 = vld [vmem:[%s3313_s19 + $0x50] sm:$0x1]  ;;  %v3372_v50 = vld [vmem:[%s3313_s19 + $0x3c] sm:$0xff]  }
  0x17   : > { %v3342_v25 = vld [vmem:[%s3313_s19 + $0x24] sm:$0xf0]  ;;  %v3344_v26 = vor.u32 %v629_v16, %v625_v4  ;;  %v632_v27 = vshll.u32 %v3332_v15, 16  ;;  %v3347_v28 = vpack.c.b16 %v543_v17, %v543_v17  ;;  %v675_v29 = vshll.u32 %v3330_v14, 16  ;;  %v3375_v51 = vld [vmem:[%s3313_s19 + $0x3c] sm:$0xf0] }
  0x18   : > { %v3351_v31 = vor.u32 %v605_v21, %v601_v7  ;;  %v608_v32 = vshll.u32 %v3336_v20, 16  ;;  %v582_v33 = vor.u32 %v581_v22, %v577_v12  ;;  %v3354_v34 = vpack.c.b16 %v551_v23, %v551_v23  ;;  %v284_v56 = vld [vmem:[%s3313_s19 + $0x44] sm:$0x1]  ;;  %v3385_v57 = vld [vmem:[%s3313_s19 + $0x54] sm:$0xff]   ;;  %v286_v3 = vld [vmem:[%s3313_s19 + $0x5c] sm:$0x1] }
  0x19   : > { %4522 = vst [vmem:[#allocation2_spill] sm:$0xff] %v3344_v26  ;;  %v634_v36 = vrot.slane %v632_v27, 1  ;;  %v584_v37 = vshll.u32 %v3347_v28, 16  ;;  %v677_v38 = vrot.slane %v675_v29, 1  ;;  %v546_v41 = vunpack.c.l.b16 %v282_v30  ;;  %v3388_v58 = vld [vmem:[%s3313_s19 + $0x54] sm:$0xf0] }
  0x1a   : > { %v610_v39 = vrot.slane %v608_v32, 1  ;;  %v680_v40 = vshll.u32 %v3354_v34, 16  ;;  %v549_v46 = vunpack.c.l.b16 %v285_v35  ;;  %v649_v54 = vshrl.u32 %v3360_v42, 16  ;;  %v3399_v4 = vld [vmem:[%s3313_s19 + $0xc] sm:$0xff]   ;;  %v280_v16 = vld [vmem:[%s3313_s19 + $0x14] sm:$0x1] }
  0x1b   : > { %v635_v43 = vsel %vm575_vm0, %v3344_v26, %v634_v36  ;;  %v586_v44 = vrot.slane %v584_v37, 1  ;;  %v3364_v45 = vor.u32 %v677_v38, %v673_v19  ;;  %v3369_v49 = vpack.c.b16 %v546_v41, %v546_v41  ;;  %v3402_v5 = vld [vmem:[%s3313_s19 + $0xc] sm:$0xf0]  ;;  %v3414_v21 = vld [vmem:[%s3313_s19 + $0x84] sm:$0xff]   ;;  %v290_v36 = vld [vmem:[%s3313_s19 + $0x8c] sm:$0x1] }
  0x1c   : > { %776 = vrot.lane.b32.xlu2 %v635_v43, %s3261_s20  ;;  %v611_v47 = vsel %vm575_vm0, %v3351_v31, %v610_v39  ;;  %v682_v48 = vrot.slane %v680_v40, 1  ;;  %v3379_v53 = vpack.c.b16 %v549_v46, %v549_v46  ;;  %v651_v55 = vshll.u32 %v3360_v42, 16  ;;  %v3417_v22 = vld [vmem:[%s3313_s19 + $0x84] sm:$0xf0]  ;;  %v289_v43 = vld [vmem:[%s3313_s19 + $0x80] sm:$0x1] }
  0x1d   : > { %4523 = vst [vmem:[#allocation3_spill] sm:$0xff] %v3364_v45  ;;  %772 = vrot.lane.b32.xlu1 %v611_v47, %s3261_s20  ;;  %v587_v52 = vsel %vm575_vm0, %v582_v33, %v586_v44  ;;  %v613_v60 = vshrl.u32 %v3339_v24, 16  ;;  %v615_v61 = vshll.u32 %v3339_v24, 16  ;;  %v620_v62 = vshll.u32 %v3369_v49, 16 }
  0x1e   : > { %768 = vrot.lane.b32.xlu0 %v587_v52, %s3261_s20  ;;  %v683_v59 = vsel %vm575_vm0, %v3364_v45, %v682_v48  ;;  %v653_v63 = vrot.slane %v651_v55, 1  ;;  %v656_v1 = vshll.u32 %v3379_v53, 16  ;;  %v548_v8 = vunpack.c.l.b16 %v284_v56  ;;  %v3438_v56 = vld [vmem:[%s3313_s19 + $0x78] sm:$0xff]   ;;  %v3169_v45 = vld [vmem:[%s3313_s19 + $0x24] sm:$0xe] }
  0x1f   : > { %v617_v6 = vrot.slane %v615_v61, 1  ;;  %v622_v7 = vrot.slane %v620_v62, 1  ;;  %v550_v13 = vunpack.c.l.b16 %v286_v3  ;;  %v637_v18 = vshrl.u32 %v3372_v50, 16  ;;  %v288_v3 = vld [vmem:[%s3313_s19 + $0x74] sm:$0x1] }
  0x20   : > { %v3404_v9 = vor.u32 %v653_v63, %v649_v54  ;;  %v658_v10 = vrot.slane %v656_v1, 1  ;;  %v3406_v12 = vpack.c.b16 %v548_v8, %v548_v8  ;;  %v639_v19 = vshll.u32 %v3372_v50, 16  ;;  %v3444_v63 = vld [vmem:[%s3313_s19 + $0x6c] sm:$0xff]  }
  0x21   : > { %v618_v11 = vor.u32 %v617_v6, %v613_v60  ;;  %v3422_v29 = vpack.c.b16 %v550_v13, %v550_v13  ;;  %v661_v32 = vshrl.u32 %v3385_v57, 16  ;;  %v663_v33 = vshll.u32 %v3385_v57, 16  ;;  %v3447_v1 = vld [vmem:[%s3313_s19 + $0x6c] sm:$0xf0] }
  0x22   : > { %v659_v17 = vsel %vm575_vm0, %v3404_v9, %v658_v10  ;;  %v644_v27 = vshll.u32 %v3406_v12, 16  ;;  %v641_v30 = vrot.slane %v639_v19, 1  ;;  %v544_v35 = vunpack.c.l.b16 %v280_v16 }
  0x23   : > { %v623_v23 = vsel %vm575_vm0, %v618_v11, %v622_v7  ;;  %v668_v38 = vshll.u32 %v3422_v29, 16  ;;  %v665_v40 = vrot.slane %v663_v33, 1  ;;  %v589_v46 = vshrl.u32 %v3399_v4, 16 }
  0x24   : > { %784 = vrot.lane.b32.xlu2 %v683_v59, %s3261_s20  ;;  %v646_v37 = vrot.slane %v644_v27, 1  ;;  %v642_v39 = vor.u32 %v641_v30, %v637_v18  ;;  %v3430_v41 = vpack.c.b16 %v544_v35, %v544_v35  ;;  %v591_v47 = vshll.u32 %v3399_v4, 16  ;;  %v293_v18 = vld [vmem:[%s3313_s19 + $0xb0] sm:$0x1]  ;;  %v3461_v27 = vld [vmem:[%s3313_s19 + $0xa8] sm:$0xff]  }
  0x25   : > { %774 = vrot.lane.b32.xlu1 %v623_v23, %s3261_s20  ;;  %v670_v44 = vrot.slane %v668_v38, 1  ;;  %v554_v48 = vunpack.c.l.b16 %v290_v36  ;;  %v666_v54 = vor.u32 %v665_v40, %v661_v32  ;;  %v553_v61 = vunpack.c.l.b16 %v289_v43  ;;  %v3472_v40 = vld [vmem:[%s3313_s19 + $0x9c] sm:$0xf0] }
  0x26   : > { %780 = vrot.lane.b32.xlu0 %v659_v17, %s3261_s20  ;;  %v647_v52 = vsel %vm575_vm0, %v642_v39, %v646_v37  ;;  %v596_v55 = vshll.u32 %v3430_v41, 16  ;;  %v593_v59 = vrot.slane %v591_v47, 1  ;;  %v697_v62 = vshrl.u32 %v3438_v56, 16  ;;  %v3469_v39 = vld [vmem:[%s3313_s19 + $0x9c] sm:$0xff]  }
  0x27   : > { %v3440_v60 = vpack.c.b16 %v554_v48, %v554_v48  ;;  %v671_v6 = vsel %vm575_vm0, %v666_v54, %v670_v44  ;;  %v709_v8 = vshrl.u32 %v3414_v21, 16  ;;  %v711_v10 = vshll.u32 %v3414_v21, 16  ;;  %v292_v48 = vld [vmem:[%s3313_s19 + $0xa4] sm:$0x1] }
  0x28   : > { %v598_v7 = vrot.slane %v596_v55, 1  ;;  %v594_v11 = vor.u32 %v593_v59, %v589_v46  ;;  %v3455_v16 = vpack.c.b16 %v553_v61, %v553_v61  ;;  %v699_v17 = vshll.u32 %v3438_v56, 16  ;;  %v291_v61 = vld [vmem:[%s3313_s19 + $0x98] sm:$0x1] }
  0x29   : > { %v716_v13 = vshll.u32 %v3440_v60, 16  ;;  %v713_v19 = vrot.slane %v711_v10, 1  ;;  %v552_v23 = vunpack.c.l.b16 %v288_v3  ;;  %v557_v38 = vunpack.c.l.b16 %v293_v18 }
  0x2a   : > { %v599_v30 = vsel %vm575_vm0, %v594_v11, %v598_v7  ;;  %v701_v33 = vrot.slane %v699_v17, 1  ;;  %v704_v35 = vshll.u32 %v3455_v16, 16  ;;  %v745_v46 = vshrl.u32 %v3461_v27, 16  ;;  %v3489_v7 = vld [vmem:[%s3313_s19 + $0x90] sm:$0xff]  }
  0x2b   : > { %v718_v32 = vrot.slane %v716_v13, 1  ;;  %v714_v36 = vor.u32 %v713_v19, %v709_v8  ;;  %v3466_v37 = vpack.c.b16 %v552_v23, %v552_v23  ;;  %v747_v47 = vshll.u32 %v3461_v27, 16  ;;  %v3166_v13 = vld [vmem:[%s3313_s19 + $0xc] sm:$0xe] }
  0x2c   : > { %778 = vrot.lane.b32.xlu2 %v647_v52, %s3261_s20  ;;  %v3474_v43 = vor.u32 %v701_v33, %v697_v62  ;;  %v706_v44 = vrot.slane %v704_v35, 1  ;;  %v685_v54 = vshrl.u32 %v3444_v63, 16  ;;  %v687_v55 = vshll.u32 %v3444_v63, 16 }
  0x2d   : > { %782 = vrot.lane.b32.xlu1 %v671_v6, %s3261_s20  ;;  %v719_v52 = vsel %vm575_vm0, %v714_v36, %v718_v32  ;;  %v692_v59 = vshll.u32 %v3466_v37, 16  ;;  %v3486_v3 = vpack.c.b16 %v557_v38, %v557_v38  ;;  %v749_v6 = vrot.slane %v747_v47, 1 }
  0x2e   : > { %770 = vrot.lane.b32.xlu0 %v599_v30, %s3261_s20  ;;  %v707_v62 = vsel %vm575_vm0, %v3474_v43, %v706_v44  ;;  %v689_v8 = vrot.slane %v687_v55, 1  ;;  %v556_v11 = vunpack.c.l.b16 %v292_v48  ;;  %v555_v19 = vunpack.c.l.b16 %v291_v61  ;;  %v3508_v48 = vld [vmem:[%s3313_s19 + $0xb4] sm:$0xff]   ;;  %v3025_v61 = vld [vmem:[%s3313_s19] sm:$0xe] }
  0x2f   : > { %v694_v10 = vrot.slane %v692_v59, 1  ;;  %v3493_v17 = vor.u32 %v749_v6, %v745_v46  ;;  %v752_v18 = vshll.u32 %v3486_v3, 16  ;;  %v723_v32 = vshll.u32 %v3489_v7, 16  ;;  %v3024_v59 = vld [vmem:[%s3313_s19] sm:$0xf0] }
  0x30   : > { %v690_v23 = vor.u32 %v689_v8, %v685_v54  ;;  %v3497_v30 = vpack.c.b16 %v556_v11, %v556_v11  ;;  %v3500_v35 = vpack.c.b16 %v555_v19, %v555_v19  ;;  %v721_v36 = vshrl.u32 %v3489_v7, 16  ;;  %v294_v11 = vld [vmem:[%s3313_s19 + $0xbc] sm:$0x1] }
  0x31   : > { %v754_v33 = vrot.slane %v752_v18, 1  ;;  %v733_v44 = vshrl.u32 %v3469_v39, 16  ;;  %v735_v46 = vshll.u32 %v3469_v39, 16  ;;  %v725_v54 = vrot.slane %v723_v32, 1 }
  0x32   : > { %v695_v38 = vsel %vm575_vm0, %v690_v23, %v694_v10  ;;  %v740_v47 = vshll.u32 %v3497_v30, 16  ;;  %v728_v55 = vshll.u32 %v3500_v35, 16  ;;  %v3167_v10 = vor.u32 %v3166_v13, %v3402_v5 }
  0x33   : > { %v737_v6 = vrot.slane %v735_v46, 1  ;;  %v3521_v18 = vor.u32 %v725_v54, %v721_v36  ;;  %v3026_v32 = vor.u32 %v3025_v61, %v3024_v59  ;;  %v558_v26 = vunpack.c.l.b16 %v294_v11 }
  0x34   : > { %790 = vrot.lane.b32.xlu2 %v719_v52, %s3261_s20  ;;  %v3511_v52 = vld [vmem:[%s3313_s19 + $0xb4] sm:$0xf0]  ;;  %v742_v8 = vrot.slane %v740_v47, 1  ;;  %v730_v19 = vrot.slane %v728_v55, 1  ;;  %v852_v5 = vrot.slane %v3167_v10, 1  ;;  %v850_v13 = vrot.slane %v3347_v28, 1 }
  0x35   : > { %788 = vrot.lane.b32.xlu1 %v707_v62, %s3261_s20  ;;  %v755_v62 = vsel %vm575_vm0, %v3493_v17, %v754_v33  ;;  %v738_v23 = vor.u32 %v737_v6, %v733_v44  ;;  %v3531_v36 = vpack.c.b16 %v558_v26, %v558_v26  ;;  %v3030_v44 = vld [vmem:[%s3313_s19 + $0x30] sm:$0xf0]  ;;  %v849_v47 = vrot.slane %v3026_v32, 1  ;;  %v3028_v26 = vld [vmem:[%s3313_s19 + $0x18] sm:$0xe] }
  0x36   : > { %786 = vrot.lane.b32.xlu0 %v695_v38, %s3261_s20  ;;  %v853_v38 = vrot.slane %v3430_v41, 1  ;;  %v731_v46 = vsel %vm575_vm0, %v3521_v18, %v730_v19  ;;  %v3031_v41 = vld [vmem:[%s3313_s19 + $0x30] sm:$0xe]  ;;  %v757_v54 = vshrl.u32 %v3508_v48, 16  ;;  %v759_v55 = vshll.u32 %v3508_v48, 16 }
  0x37   : > { %v743_v33 = vsel %vm575_vm0, %v738_v23, %v742_v8  ;;  %v764_v59 = vshll.u32 %v3531_v36, 16  ;;  %v3032_v6 = vor.u32 %v3031_v41, %v3030_v44  ;;  %v3027_v8 = vld [vmem:[%s3313_s19 + $0x18] sm:$0xf0]  ;;  %v3172_v10 = vld [vmem:[%s3313_s19 + $0x54] sm:$0xe]  ;;  %v851_v11 = vsel %vm848_vm1, %v849_v47, %v850_v13 }
  0x38   : > { %v854_v61 = vsel %vm848_vm1, %v852_v5, %v853_v38  ;;  %v3170_v23 = vor.u32 %v3169_v45, %v3342_v25  ;;  %v862_v32 = vrot.slane %v3332_v15, 1  ;;  %v3175_v5 = vld [vmem:[%s3313_s19 + $0x3c] sm:$0xe]  ;;  %v859_v13 = vrot.slane %v3369_v49, 1  ;;  %v3033_v45 = vld [vmem:[%s3313_s19 + $0x48] sm:$0xf0] }
  0x39   : > { %v766_v28 = vrot.slane %v764_v59, 1  ;;  %v856_v25 = vrot.slane %v3336_v20, 1  ;;  %v3034_v41 = vld [vmem:[%s3313_s19 + $0x48] sm:$0xe]  ;;  %v3178_v49 = vld [vmem:[%s3313_s19 + $0x6c] sm:$0xe] }
  0x3a   : > { %v858_v44 = vrot.slane %v3170_v23, 1  ;;  %v3035_v59 = vor.u32 %v3034_v41, %v3033_v45  ;;  %v874_v45 = vrot.slane %v3354_v34, 1  ;;  %v3043_v41 = vld [vmem:[%s3313_s19 + $0x90] sm:$0xe] }
  0x3c   : > { %796 = vrot.lane.b32.xlu2 %v755_v62, %s3261_s20  ;;  %v761_v62 = vrot.slane %v759_v55, 1  ;;  %v860_v55 = vsel %vm848_vm1, %v858_v44, %v859_v13 }
  0x3d   : > { %794 = vrot.lane.b32.xlu1 %v743_v33, %s3261_s20  ;;  %v861_v33 = vrot.slane %v3032_v6, 1  ;;  %v3176_v6 = vor.u32 %v3175_v5, %v3375_v51  ;;  %v3181_v51 = vld [vmem:[%s3313_s19 + $0x9c] sm:$0xe] }
  0x3e   : > { %792 = vrot.lane.b32.xlu0 %v731_v46, %s3261_s20  ;;  %v762_v19 = vor.u32 %v761_v62, %v757_v54  ;;  %v3029_v46 = vor.u32 %v3028_v26, %v3027_v8  ;;  %v3173_v54 = vor.u32 %v3172_v10, %v3388_v58  ;;  %v871_v62 = vrot.slane %v3422_v29, 1  ;;  %v3039_v8 = vld [vmem:[%s3313_s19 + $0x78] sm:$0xf0]  ;;  %v3040_v58 = vld [vmem:[%s3313_s19 + $0x78] sm:$0xe] }
  0x3f   : > { %v863_v15 = vsel %vm848_vm1, %v861_v33, %v862_v32  ;;  %v868_v26 = vrot.slane %v3379_v53, 1  ;;  %v3041_v23 = vor.u32 %v3040_v58, %v3039_v8  ;;  %v3036_v32 = vld [vmem:[%s3313_s19 + $0x60] sm:$0xf0]  ;;  %v3037_v29 = vld [vmem:[%s3313_s19 + $0x60] sm:$0xe]  ;;  %v3179_v33 = vor.u32 %v3178_v49, %v3447_v1  ;;  %v3599_v58 = vld [vmem:[%s3313_s19 + $0xc] sm:$0xff]  }
  0x40   : > { %v767_v38 = vsel %vm575_vm0, %v762_v19, %v766_v28  ;;  %v855_v47 = vrot.slane %v3029_v46, 1  ;;  %v870_v20 = vrot.slane %v3173_v54, 1  ;;  %v867_v28 = vrot.slane %v3035_v59, 1  ;;  %v3042_v1 = vld [vmem:[%s3313_s19 + $0x90] sm:$0xf0] }
  0x41   : > { %v865_v19 = vrot.slane %v3406_v12, 1  ;;  %v880_v53 = vrot.slane %v3455_v16, 1  ;;  %v879_v5 = vrot.slane %v3041_v23, 1  ;;  %v3038_v44 = vor.u32 %v3037_v29, %v3036_v32  ;;  %v3184_v12 = vld [vmem:[%s3313_s19 + $0x84] sm:$0xe] }
  0x42   : > { %v872_v10 = vsel %vm848_vm1, %v870_v20, %v871_v62  ;;  %v876_v13 = vrot.slane %v3179_v33, 1  ;;  %v889_v49 = vrot.slane %v3497_v30, 1  ;;  %v886_v20 = vrot.slane %v3500_v35, 1  ;;  %v3045_v30 = vld [vmem:[%s3313_s19 + $0xa8] sm:$0xf0]  ;;  %v3616_v29 = vld [vmem:[%s3313_s19 + $0x24] sm:$0xff]  }
  0x43   : > { %v873_v16 = vrot.slane %v3038_v44, 1  ;;  %v883_v8 = vrot.slane %v3440_v60, 1  ;;  %v892_v32 = vrot.slane %v3486_v3, 1  ;;  %v3627_v3 = vld [vmem:[%s3313_s19 + $0x54] sm:$0xff]   ;;  %v3635_v33 = vld [vmem:[%s3313_s19 + $0x3c] sm:$0xff]  }
  0x44   : > { %899 = vrot.lane.b32.xlu2 %v854_v61, %s3262_s21  ;;  %v857_v61 = vsel %vm848_vm1, %v855_v47, %v856_v25  ;;  %v877_v25 = vrot.slane %v3466_v37, 1  ;;  %v3182_v47 = vor.u32 %v3181_v51, %v3472_v40  ;;  %v3187_v37 = vld [vmem:[%s3313_s19 + $0xb4] sm:$0xe]  ;;  %v3619_v51 = vld [vmem:[%s3313_s19 + $0x24] sm:$0xf0] }
  0x45   : > { %897 = vrot.lane.b32.xlu1 %v851_v11, %s3262_s21  ;;  %v864_v11 = vrot.slane %v3176_v6, 1  ;;  %v875_v59 = vsel %vm848_vm1, %v873_v16, %v874_v45  ;;  %v3189_v44 = vld [vmem:[%s3313_s19 + $0x6c] sm:$0xf0]  ;;  %v3666_v45 = vld [vmem:[%s3313_s19 + $0x84] sm:$0xf0]  ;;  %v3677_v16 = vld [vmem:[%s3313_s19 + $0xb4] sm:$0xff]  }
  0x46   : > { %798 = vrot.lane.b32.xlu0 %v767_v38, %s3261_s20  ;;  %v869_v38 = vsel %vm848_vm1, %v867_v28, %v868_v26  ;;  %v878_v54 = vsel %vm848_vm1, %v876_v13, %v877_v25  ;;  %v888_v34 = vrot.slane %v3182_v47, 1  ;;  %v3602_v28 = vld [vmem:[%s3313_s19 + $0xc] sm:$0xf0]  ;;  %v2682_v13 = vld [vmem:[%s3313_s19 + $0x9c] sm:$0xff]   ;;  %v3680_v47 = vld [vmem:[%s3313_s19 + $0xb4] sm:$0xf0]  ;;  %s4432_s20 = scalar_lea.vmem %s4519_s3, %s2820_s17 }
  0x47   : > { %v866_v46 = vsel %vm848_vm1, %v864_v11, %v865_v19  ;;  %v895_v19 = vrot.slane %v3531_v36, 1  ;;  %v3658_v25 = vld [vmem:[%s3313_s19 + $0x9c] sm:$0xf0] }
  0x48   : > { %v890_v62 = vsel %vm848_vm1, %v888_v34, %v889_v49 }
  0x4c   : > { %905 = vrot.lane.b32.xlu2 %v863_v15, %s3262_s21  ;;  %v881_v15 = vsel %vm848_vm1, %v879_v5, %v880_v53  ;;  %v3638_v53 = vld [vmem:[%s3313_s19 + $0x3c] sm:$0xf0]  ;;  %v2674_v5 = vld [vmem:[%s3313_s19 + $0x6c] sm:$0xff]  }
  0x4d   : > { %903 = vrot.lane.b32.xlu1 %v860_v55, %s3262_s21  ;;  %v3044_v55 = vor.u32 %v3043_v41, %v3042_v1  ;;  %v2698_v41 = vld [vmem:[%s3313_s19 + $0x74] sm:$0x1] }
  0x4e   : > { %901 = vrot.lane.b32.xlu0 %v857_v61, %s3262_s21  ;;  %v3185_v61 = vor.u32 %v3184_v12, %v3417_v22  ;;  %v3046_v22 = vld [vmem:[%s3313_s19 + $0xa8] sm:$0xe] }
  0x4f   : > { %v885_v40 = vrot.slane %v3044_v55, 1  ;;  %v3047_v11 = vor.u32 %v3046_v22, %v3045_v30  ;;  %v1065_v55 = vunpack.c.l.b16 %v2698_v41  ;;  %v2762_v41 = vld [vmem:[%s3313_s19 + $0x80] sm:$0x1] }
  0x50   : > { %v882_v6 = vrot.slane %v3185_v61, 1  ;;  %v1188_v61 = vshll.u32 %v2674_v5, 16 }
  0x51   : > { %v887_v26 = vsel %vm848_vm1, %v885_v40, %v886_v20  ;;  %v891_v23 = vrot.slane %v3047_v11, 1  ;;  %v3696_v40 = vld [vmem:[%s3313_s19 + $0xc0] sm:$0xff]   ;;  %v1081_v20 = vpack.c.b16 %v1065_v55, %v1065_v55  ;;  %v1577_v55 = vunpack.c.l.b16 %v2762_v41 }
  0x52   : > { %v884_v35 = vsel %vm848_vm1, %v882_v6, %v883_v8  ;;  %v1234_v6 = vshrl.u32 %v2682_v13, 16 }
  0x53   : > { %v893_v36 = vsel %vm848_vm1, %v891_v23, %v892_v32  ;;  %v1386_v22 = vrot.slane %v1081_v20, 1  ;;  %v1193_v11 = vshll.u32 %v1081_v20, 16 }
  0x54   : > { %911 = vrot.lane.b32.xlu2 %v872_v10, %s3262_s21  ;;  %v3188_v10 = vor.u32 %v3187_v37, %v3511_v52 }
  0x55   : > { %909 = vrot.lane.b32.xlu1 %v869_v38, %s3262_s21  ;;  %v3630_v38 = vld [vmem:[%s3313_s19 + $0x54] sm:$0xf0] }
  0x56   : > { %907 = vrot.lane.b32.xlu0 %v866_v46, %s3262_s21  ;;  %v894_v60 = vrot.slane %v3188_v10, 1  ;;  %v1186_v10 = vshrl.u32 %v2674_v5, 16 }
  0x58   : > { %v896_v52 = vsel %vm848_vm1, %v894_v60, %v895_v19  ;;  %v3193_v19 = vld [vmem:[%s3313_s19 + $0x9c] sm:$0xe] }
  0x5c   : > { %917 = vrot.lane.b32.xlu2 %v881_v15, %s3262_s21  ;;  %v3190_v15 = vld [vmem:[%s3313_s19 + $0x6c] sm:$0xe] }
  0x5d   : > { %915 = vrot.lane.b32.xlu1 %v878_v54, %s3262_s21 }
  0x5e   : > { %913 = vrot.lane.b32.xlu0 %v875_v59, %s3262_s21  ;;  %v1236_v59 = vshll.u32 %v2682_v13, 16 }
  0x60   : > { %v1238_v8 = vrot.slane %v1236_v59, 1 }
  0x62   : > { %v1239_v32 = vor.u32 %v1238_v8, %v1234_v6  ;;  %v3085_v6 = vld [vmem:[%s3313_s19 + $0x78] sm:$0xe]  ;;  %v2694_v8 = vld [vmem:[%s3313_s19 + $0x44] sm:$0x1] }
  0x64   : > { %923 = vrot.lane.b32.xlu2 %v890_v62, %s3262_s21  ;;  %v3191_v62 = vor.u32 %v3190_v15, %v3189_v44  ;;  %v2766_v44 = vld [vmem:[%s3313_s19 + $0xb0] sm:$0x1] }
  0x65   : > { %921 = vrot.lane.b32.xlu1 %v887_v26, %s3262_s21 }
  0x66   : > { %919 = vrot.lane.b32.xlu0 %v884_v35, %s3262_s21  ;;  %v1385_v26 = vrot.slane %v3191_v62, 1  ;;  %v1190_v35 = vrot.slane %v1188_v61, 1  ;;  %v3194_v61 = vor.u32 %v3193_v19, %v3658_v25  ;;  %v3084_v62 = vld [vmem:[%s3313_s19 + $0x78] sm:$0xf0] }
  0x67   : > { %v3086_v19 = vor.u32 %v3085_v6, %v3084_v62 }
  0x6c   : > { %1009 = vrot.lane.b32.xlu2 %v3599_v58, %s3263_s22 }
  0x6d   : > { %927 = vrot.lane.b32.xlu1 %v896_v52, %s3262_s21 }
  0x6e   : > { %925 = vrot.lane.b32.xlu0 %v893_v36, %s3262_s21 }
  0x74   : > { %1015 = vrot.lane.b32.xlu2 %v3316_v0, %s3263_s22 }
  0x75   : > { %1013 = vrot.lane.b32.xlu1 %v3616_v29, %s3263_s22 }
  0x76   : > { %v3642_v46 = vpop.permute.xlu2 %776  ;;  %1011 = vrot.lane.b32.xlu0 %v3320_v2, %s3263_s22  ;;  %v3663_v2 = vld [vmem:[%s3313_s19 + $0x84] sm:$0xff]  }
  0x7c   : > { %1021 = vrot.lane.b32.xlu2 %v3627_v3, %s3263_s22 }
  0x7d   : > { %1019 = vrot.lane.b32.xlu1 %v3360_v42, %s3263_s22  ;;  %v2702_v42 = vld [vmem:[%s3313_s19 + $0xa4] sm:$0x1] }
  0x7e   : > { %v3652_v12 = vpop.permute.xlu2 %784  ;;  %1017 = vrot.lane.b32.xlu0 %v3635_v33, %s3263_s22  ;;  %v1069_v54 = vunpack.c.l.b16 %v2702_v42  ;;  %v1195_v42 = vrot.slane %v1193_v11, 1  ;;  %v1397_v11 = vrot.slane %v3194_v61, 1 }
  0x84   : > { %1027 = vrot.lane.b32.xlu2 %v3438_v56, %s3263_s22 }
  0x85   : > { %1025 = vrot.lane.b32.xlu1 %v2674_v5, %s3263_s22  ;;  %v1387_v5 = vsel %vm848_vm1, %v1385_v26, %v1386_v22  ;;  %v1593_v26 = vpack.c.b16 %v1577_v55, %v1577_v55 }
  0x86   : > { %v3669_v1 = vpop.permute.xlu2 %778  ;;  %1023 = vrot.lane.b32.xlu0 %v3330_v14, %s3263_s22  ;;  %v3689_v14 = vpack.c.b16 %v1069_v54, %v1069_v54  ;;  %v1581_v54 = vunpack.c.l.b16 %v2766_v44 }
  0x88   : > { %v1241_v30 = vshll.u32 %v3689_v14, 16  ;;  %v3723_v22 = vpack.c.b16 %v1581_v54, %v1581_v54  ;;  %v1398_v25 = vrot.slane %v3689_v14, 1  ;;  %v1898_v54 = vrot.slane %v1593_v26, 1 }
  0x8a   : > { %v1243_v52 = vrot.slane %v1241_v30, 1  ;;  %v1753_v44 = vshll.u32 %v3723_v22, 16  ;;  %v1399_v14 = vsel %vm848_vm1, %v1397_v11, %v1398_v25  ;;  %v3090_v11 = vld [vmem:[%s3313_s19 + $0xa8] sm:$0xf0]  ;;  %v3091_v25 = vld [vmem:[%s3313_s19 + $0xa8] sm:$0xe] }
  0x8c   : > { %1033 = vrot.lane.b32.xlu2 %v2682_v13, %s3263_s22  ;;  %v1191_v13 = vor.u32 %v1190_v35, %v1186_v10  ;;  %v1244_v15 = vsel %vm575_vm0, %v1239_v32, %v1243_v52  ;;  %v2690_v10 = vld [vmem:[%s3313_s19 + $0x14] sm:$0x1]  ;;  %v1061_v32 = vunpack.c.l.b16 %v2694_v8  ;;  %v1755_v62 = vrot.slane %v1753_v44, 1 }
  0x8d   : > { %1031 = vrot.lane.b32.xlu1 %v3489_v7, %s3263_s22 }
  0x8e   : > { %v3685_v37 = vpop.permute.xlu2 %790  ;;  %1029 = vrot.lane.b32.xlu0 %v3663_v2, %s3263_s22  ;;  %v1196_v59 = vsel %vm575_vm0, %v1191_v13, %v1195_v42  ;;  %v1140_v13 = vshll.u32 %v3635_v33, 16  ;;  %v1705_v42 = vshll.u32 %v1593_v26, 16  ;;  %v3738_v55 = vpack.c.b16 %v1061_v32, %v1061_v32 }
  0x8f   : > { %v3687_v34 = vpop.permute.xlu1 %772  ;;  %v1090_v32 = vshrl.u32 %v3599_v58, 16 }
  0x90   : > { %v3693_v49 = vpop.permute.xlu0 %768  ;;  %v1707_v8 = vrot.slane %v1705_v42, 1  ;;  %v1142_v26 = vrot.slane %v1140_v13, 1 }
  0x94   : > { %1039 = vrot.lane.b32.xlu2 %v3696_v40, %s3263_s22 }
  0x95   : > { %1037 = vrot.lane.b32.xlu1 %v3677_v16, %s3263_s22 }
  0x96   : > { %v3703_v60 = vpop.permute.xlu2 %796  ;;  %1035 = vrot.lane.b32.xlu0 %v3461_v27, %s3263_s22 }
  0x97   : > { %v3706_v23 = vpop.permute.xlu1 %774 }
  0x98   : > { %v3710_v36 = vpop.permute.xlu0 %780 }
  0x9c   : > { %1425 = vrot.lane.b32.xlu2 %v1387_v5, %s3264_s23  ;;  %v1057_v5 = vunpack.c.l.b16 %v2690_v10  ;;  %v1145_v10 = vshll.u32 %v3738_v55, 16 }
  0x9d   : > { %1305 = vrot.lane.b32.xlu1 %v1244_v15, %s3265_s24  ;;  %v1897_v15 = vrot.slane %v3086_v19, 1  ;;  %v1756_v19 = vsel %vm575_vm0, %v3493_v17, %v1755_v62 }
  0x9e   : > { %v900_v20 = vpop.permute.xlu2 %899  ;;  %1297 = vrot.lane.b32.xlu0 %v1196_v59, %s3265_s24  ;;  %v1092_v59 = vshll.u32 %v3599_v58, 16  ;;  %v3749_v6 = vpack.c.b16 %v1057_v5, %v1057_v5  ;;  %v1708_v5 = vsel %vm575_vm0, %v3474_v43, %v1707_v8  ;;  %v1147_v42 = vrot.slane %v1145_v10, 1 }
  0x9f   : > { %v783_v30 = vpop.permute.xlu1 %782 }
  0xa0   : > { %v771_v35 = vpop.permute.xlu0 %770  ;;  %v1097_v44 = vshll.u32 %v3749_v6, 16 }
  0xa1   : > { %v1957_v52 = vsel %vm1953_vm2, %v3399_v4, %v771_v35  ;;  %v1963_v4 = vsel %vm1953_vm2, %v3316_v0, %v3642_v46  ;;  %v1899_v0 = vsel %vm848_vm1, %v1897_v15, %v1898_v54  ;;  %v1138_v46 = vshrl.u32 %v3635_v33, 16  ;;  %v3196_v33 = vld [vmem:[%s3313_s19 + $0x3c] sm:$0xe]  ;;  %v3199_v15 = vld [vmem:[%s3313_s19 + $0xc] sm:$0xe] }
  0xa2   : > { %v3735_v41 = vsel %vm1986_vm3, %v1957_v52, %v900_v20  ;;  %v1094_v52 = vrot.slane %v1092_v59, 1  ;;  %v1969_v54 = vsel %vm1953_vm2, %v3385_v57, %v783_v30  ;;  %v1099_v62 = vrot.slane %v1097_v44, 1 }
  0xa3   : > { %v1143_v13 = vor.u32 %v1142_v26, %v1138_v46  ;;  %v1910_v57 = vrot.slane %v3723_v22, 1  ;;  %v3200_v44 = vor.u32 %v3199_v15, %v3602_v28  ;;  %v1374_v28 = vrot.slane %v3738_v55, 1 }
  0xa4   : > { %1545 = vrot.lane.b32.xlu2 %v3461_v27, %s3266_s25  ;;  %v1095_v59 = vor.u32 %v1094_v52, %v1090_v32  ;;  %v3197_v32 = vor.u32 %v3196_v33, %v3638_v53  ;;  %v2699_v53 = vld [vmem:[%s3313_s19 + $0x80] sm:$0x1] }
  0xa5   : > { %1537 = vrot.lane.b32.xlu1 %v3438_v56, %s3266_s25  ;;  %v1148_v46 = vsel %vm575_vm0, %v1143_v13, %v1147_v42  ;;  %v1066_v55 = vunpack.c.l.b16 %v2699_v53 }
  0xa6   : > { %v906_v27 = vpop.permute.xlu2 %905  ;;  %1433 = vrot.lane.b32.xlu0 %v1399_v14, %s3264_s23  ;;  %v3092_v14 = vor.u32 %v3091_v25, %v3090_v11  ;;  %v3782_v11 = vld [vmem:[%s3313_s19 + $0x48] sm:$0xff]   ;;  %v1100_v25 = vsel %vm575_vm0, %v1095_v59, %v1099_v62  ;;  %v1362_v62 = vrot.slane %v3749_v6, 1 }
  0xa7   : > { %v789_v61 = vpop.permute.xlu1 %788  ;;  %v3747_v20 = vsel %vm1986_vm3, %v1963_v4, %v906_v27  ;;  %v2758_v4 = vld [vmem:[%s3313_s19 + $0x50] sm:$0x1]  ;;  %v1652_v13 = vshll.u32 %v3782_v11, 16 }
  0xa8   : > { %v3755_v35 = vpop.permute.xlu0 %786  ;;  %v1909_v26 = vrot.slane %v3092_v14, 1  ;;  %v1573_v30 = vunpack.c.l.b16 %v2758_v4  ;;  %v1975_v42 = vsel %vm1953_vm2, %v3438_v56, %v789_v61  ;;  %v3160_v4 = vld [vmem:[%s3313_s19] sm:$0xff]   ;;  %v1361_v61 = vrot.slane %v3200_v44, 1 }
  0xa9   : > { %v1955_v59 = vsel %vm1953_vm2, %v3160_v4, %v3693_v49  ;;  %v3072_v4 = vld [vmem:[%s3313_s19 + $0x18] sm:$0xf0] }
  0xaa   : > { %v3790_v22 = vpack.c.b16 %v1573_v30, %v1573_v30  ;;  %v1363_v6 = vsel %vm848_vm1, %v1361_v61, %v1362_v62  ;;  %v3073_v62 = vld [vmem:[%s3313_s19 + $0x18] sm:$0xe] }
  0xac   : > { %1937 = vrot.lane.b32.xlu2 %v1899_v0, %s3267_s26  ;;  %v2754_v0 = vld [vmem:[%s3313_s19 + $0x20] sm:$0x1] }
  0xad   : > { %1817 = vrot.lane.b32.xlu1 %v1756_v19, %s3268_s27  ;;  %v3016_v19 = vld [vmem:[%s3313_s19 + $0x18] sm:$0xff]   ;;  %v1569_v52 = vunpack.c.l.b16 %v2754_v0  ;;  %v1650_v0 = vshrl.u32 %v3782_v11, 16 }
  0xae   : > { %v912_v58 = vpop.permute.xlu2 %911  ;;  %1809 = vrot.lane.b32.xlu0 %v1708_v5, %s3268_s27  ;;  %v1911_v5 = vsel %vm848_vm1, %v1909_v26, %v1910_v57  ;;  %v1654_v26 = vrot.slane %v1652_v13, 1  ;;  %v1657_v57 = vshll.u32 %v3790_v22, 16  ;;  %v3817_v13 = vpack.c.b16 %v1066_v55, %v1066_v55  ;;  %v3844_v55 = vld [vmem:[%s3313_s19 + $0x84] sm:$0xf0] }
  0xaf   : > { %v3773_v27 = vsel %vm1986_vm3, %v1969_v54, %v912_v58  ;;  %v795_v8 = vpop.permute.xlu1 %794  ;;  %v1604_v54 = vshll.u32 %v3016_v19, 16  ;;  %v1373_v58 = vrot.slane %v3197_v32, 1  ;;  %v3801_v15 = vpack.c.b16 %v1569_v52, %v1569_v52 }
  0xb0   : > { %v3779_v10 = vpop.permute.xlu0 %792  ;;  %v1655_v44 = vor.u32 %v1654_v26, %v1650_v0  ;;  %v1205_v61 = vshll.u32 %v3817_v13, 16  ;;  %v2703_v0 = vld [vmem:[%s3313_s19 + $0xb0] sm:$0x1]  ;;  %v3161_v26 = vld [vmem:[%s3313_s19 + $0x18] sm:$0xff]  }
  0xb1   : > { %v1606_v32 = vrot.slane %v1604_v54, 1  ;;  %v1375_v49 = vsel %vm848_vm1, %v1373_v58, %v1374_v28  ;;  %v1609_v52 = vshll.u32 %v3801_v15, 16  ;;  %v1961_v58 = vsel %vm1953_vm2, %v3339_v24, %v3706_v23 }
  0xb2   : > { %v1959_v24 = vsel %vm1953_vm2, %v3161_v26, %v3687_v34  ;;  %v3066_v34 = vld [vmem:[%s3313_s19 + $0xa8] sm:$0xf0]  ;;  %v3061_v26 = vld [vmem:[%s3313_s19 + $0x78] sm:$0xe] }
  0xb4   : > { %1289 = vrot.lane.b32.xlu2 %v1148_v46, %s3265_s24 }
  0xb5   : > { %1281 = vrot.lane.b32.xlu1 %v1100_v25, %s3265_s24  ;;  %v1602_v25 = vshrl.u32 %v3016_v19, 16 }
  0xb6   : > { %v918_v14 = vpop.permute.xlu2 %917  ;;  %1945 = vrot.lane.b32.xlu0 %v1911_v5, %s3267_s26  ;;  %v1659_v5 = vrot.slane %v1657_v57, 1  ;;  %v3841_v57 = vld [vmem:[%s3313_s19 + $0x84] sm:$0xff]  }
  0xb7   : > { %v3798_v33 = vsel %vm1986_vm3, %v1975_v42, %v918_v14  ;;  %v898_v56 = vpop.permute.xlu1 %897  ;;  %v1981_v42 = vsel %vm1953_vm2, %v3469_v39, %v795_v8  ;;  %v1607_v54 = vor.u32 %v1606_v32, %v1602_v25  ;;  %v3078_v39 = vld [vmem:[%s3313_s19 + $0x48] sm:$0xf0]  ;;  %v3079_v8 = vld [vmem:[%s3313_s19 + $0x48] sm:$0xe] }
  0xb8   : > { %v1988_v46 = vsel %vm1986_vm3, %v1955_v59, %v898_v56  ;;  %v3811_v30 = vpop.permute.xlu0 %798  ;;  %v1660_v56 = vsel %vm575_vm0, %v1655_v44, %v1659_v5  ;;  %v1207_v44 = vrot.slane %v1205_v61, 1  ;;  %v3067_v5 = vld [vmem:[%s3313_s19 + $0xa8] sm:$0xe] }
  0xbc   : > { %1521 = vrot.lane.b32.xlu2 %v3016_v19, %s3266_s25  ;;  %v1611_v19 = vrot.slane %v1609_v52, 1  ;;  %v3074_v52 = vor.u32 %v3073_v62, %v3072_v4  ;;  %v3068_v62 = vor.u32 %v3067_v5, %v3066_v34  ;;  %v3883_v5 = vld [vmem:[%s3313_s19 + $0xb4] sm:$0xff]  }
  0xbd   : > { %1417 = vrot.lane.b32.xlu1 %v1375_v49, %s3264_s23  ;;  %v3080_v49 = vor.u32 %v3079_v8, %v3078_v39  ;;  %v1886_v39 = vrot.slane %v3790_v22, 1 }
  0xbe   : > { %v924_v14 = vpop.permute.xlu2 %923  ;;  %1409 = vrot.lane.b32.xlu0 %v1363_v6, %s3264_s23  ;;  %v1612_v32 = vsel %vm575_vm0, %v1607_v54, %v1611_v19  ;;  %v1070_v6 = vunpack.c.l.b16 %v2703_v0  ;;  %v1873_v4 = vrot.slane %v3074_v52, 1  ;;  %v3060_v0 = vld [vmem:[%s3313_s19 + $0x78] sm:$0xf0] }
  0xbf   : > { %v3823_v53 = vsel %vm1986_vm3, %v1981_v42, %v924_v14  ;;  %v904_v28 = vpop.permute.xlu1 %903  ;;  %v2763_v14 = vld [vmem:[%s3313_s19 + $0x8c] sm:$0x1]  ;;  %v1885_v19 = vrot.slane %v3080_v49, 1  ;;  %v1400_v49 = vrot.slane %v3068_v62, 1 }
  0xc0   : > { %v1994_v59 = vsel %vm1986_vm3, %v1961_v58, %v904_v28  ;;  %v902_v23 = vpop.permute.xlu0 %901  ;;  %v3162_v58 = vld [vmem:[%s3313_s19 + $0x48] sm:$0xff]   ;;  %v1086_v61 = vpack.c.b16 %v1070_v6, %v1070_v6 }
  0xc1   : > { %v3847_v25 = vsel %vm1986_vm3, %v1959_v24, %v902_v23  ;;  %v1967_v28 = vsel %vm1953_vm2, %v3162_v58, %v3710_v36  ;;  %v1578_v24 = vunpack.c.l.b16 %v2763_v14 }
  0xc2   : > { %v1401_v52 = vrot.slane %v1086_v61, 1  ;;  %v1253_v6 = vshll.u32 %v1086_v61, 16 }
  0xc4   : > { %1801 = vrot.lane.b32.xlu2 %v1660_v56, %s3268_s27  ;;  %v1874_v56 = vrot.slane %v3801_v15, 1  ;;  %v1887_v15 = vsel %vm848_vm1, %v1885_v19, %v1886_v39  ;;  %v1402_v39 = vsel %vm848_vm1, %v1400_v49, %v1401_v52  ;;  %v1979_v52 = vsel %vm1953_vm2, %v3489_v7, %v3779_v10  ;;  %v2691_v10 = vld [vmem:[%s3313_s19 + $0x20] sm:$0x1] }
  0xc5   : > { %1793 = vrot.lane.b32.xlu1 %v1612_v32, %s3268_s27  ;;  %v3062_v32 = vor.u32 %v3061_v26, %v3060_v0  ;;  %v3202_v0 = vld [vmem:[%s3313_s19 + $0xb4] sm:$0xe] }
  0xc6   : > { %v1010_v42 = vpop.permute.xlu2 %1009  ;;  %1529 = vrot.lane.b32.xlu0 %v3782_v11, %s3266_s25  ;;  %v1965_v11 = vsel %vm1953_vm2, %v3372_v50, %v3669_v1  ;;  %v1875_v34 = vsel %vm848_vm1, %v1873_v4, %v1874_v56  ;;  %v3201_v50 = vld [vmem:[%s3313_s19 + $0xb4] sm:$0xf0]  ;;  %v1710_v56 = vshrl.u32 %v3841_v57, 16 }
  0xc7   : > { %v3859_v54 = vsel %vm2019_vm4, %v1988_v46, %v1010_v42  ;;  %v910_v8 = vpop.permute.xlu1 %909  ;;  %v1208_v46 = vsel %vm575_vm0, %v3474_v43, %v1207_v44  ;;  %v3879_v43 = vpack.c.b16 %v1578_v24, %v1578_v24  ;;  %v1712_v44 = vshll.u32 %v3841_v57, 16 }
  0xc8   : > { %v2000_v36 = vsel %vm1986_vm3, %v1967_v28, %v910_v8  ;;  %v908_v22 = vpop.permute.xlu0 %907  ;;  %v1973_v42 = vsel %vm1953_vm2, %v3444_v63, %v3755_v35  ;;  %v1388_v58 = vrot.slane %v3062_v32, 1  ;;  %v1389_v28 = vrot.slane %v3817_v13, 1  ;;  %v2767_v35 = vld [vmem:[%s3313_s19 + $0xbc] sm:$0x1] }
  0xc9   : > { %v3874_v23 = vsel %vm1986_vm3, %v1965_v11, %v908_v22  ;;  %v1255_v8 = vrot.slane %v1253_v6, 1  ;;  %v1714_v61 = vrot.slane %v1712_v44, 1  ;;  %v1717_v63 = vshll.u32 %v3879_v43, 16  ;;  %v3205_v11 = vld [vmem:[%s3313_s19 + $0x84] sm:$0xe] }
  0xca   : > { %v1582_v24 = vunpack.c.l.b16 %v2767_v35  ;;  %v1058_v35 = vunpack.c.l.b16 %v2691_v10 }
  0xcb   : > { %v1256_v22 = vsel %vm575_vm0, %v3493_v17, %v1255_v8  ;;  %v1719_v32 = vrot.slane %v1717_v63, 1  ;;  %v2695_v17 = vld [vmem:[%s3313_s19 + $0x50] sm:$0x1]  ;;  %v1758_v8 = vshrl.u32 %v3883_v5, 16 }
  0xcc   : > { %1299 = vrot.lane.b32.xlu2 %v1208_v46, %s3265_s24  ;;  %v1390_v46 = vsel %vm848_vm1, %v1388_v58, %v1389_v28  ;;  %v1598_v44 = vpack.c.b16 %v1582_v24, %v1582_v24  ;;  %v3203_v58 = vor.u32 %v3202_v0, %v3201_v50 }
  0xcd   : > { %1929 = vrot.lane.b32.xlu1 %v1887_v15, %s3267_s26  ;;  %v1715_v15 = vor.u32 %v1714_v61, %v1710_v56 }
  0xce   : > { %v1016_v1 = vpop.permute.xlu2 %1015  ;;  %1921 = vrot.lane.b32.xlu0 %v1875_v34, %s3267_s26  ;;  %v1760_v34 = vshll.u32 %v3883_v5, 16  ;;  %v1765_v50 = vshll.u32 %v1598_v44, 16  ;;  %v1912_v61 = vrot.slane %v3203_v58, 1  ;;  %v1913_v63 = vrot.slane %v1598_v44, 1  ;;  %v3970_v58 = vld [vmem:[%s3313_s19 + $0x24] sm:$0xff]  }
  0xcf   : > { %v3891_v14 = vsel %vm2019_vm4, %v1994_v59, %v1016_v1  ;;  %v916_v19 = vpop.permute.xlu1 %915  ;;  %v3163_v59 = vld [vmem:[%s3313_s19 + $0x60] sm:$0xff]  }
  0xd0   : > { %v2006_v4 = vsel %vm1986_vm3, %v1973_v42, %v916_v19  ;;  %v1971_v62 = vsel %vm1953_vm2, %v3163_v59, %v3652_v12  ;;  %v914_v13 = vpop.permute.xlu0 %913  ;;  %v1720_v42 = vsel %vm575_vm0, %v1715_v15, %v1719_v32  ;;  %v3206_v19 = vor.u32 %v3205_v11, %v3844_v55  ;;  %v3049_v59 = vld [vmem:[%s3313_s19 + $0x18] sm:$0xe]  ;;  %v3164_v32 = vld [vmem:[%s3313_s19 + $0xa8] sm:$0xff]  }
  0xd1   : > { %v3905_v26 = vsel %vm1986_vm3, %v1971_v62, %v914_v13  ;;  %v1762_v56 = vrot.slane %v1760_v34, 1  ;;  %v1901_v13 = vrot.slane %v3879_v43, 1  ;;  %v1767_v11 = vrot.slane %v1765_v50, 1  ;;  %v3965_v34 = vld [vmem:[%s3313_s19 + $0x54] sm:$0xf0] }
  0xd2   : > { %v1900_v55 = vrot.slane %v3206_v19, 1  ;;  %v1074_v43 = vpack.c.b16 %v1058_v35, %v1058_v35  ;;  %v2759_v19 = vld [vmem:[%s3313_s19 + $0x5c] sm:$0x1]  ;;  %v2755_v35 = vld [vmem:[%s3313_s19 + $0x2c] sm:$0x1] }
  0xd3   : > { %v1763_v24 = vor.u32 %v1762_v56, %v1758_v8  ;;  %v3054_v8 = vld [vmem:[%s3313_s19 + $0x48] sm:$0xf0]  ;;  %v3055_v56 = vld [vmem:[%s3313_s19 + $0x48] sm:$0xe] }
  0xd4   : > { %1435 = vrot.lane.b32.xlu2 %v1402_v39, %s3264_s23  ;;  %v1062_v39 = vunpack.c.l.b16 %v2695_v17  ;;  %v1365_v17 = vrot.slane %v1074_v43, 1 }
  0xd5   : > { %1427 = vrot.lane.b32.xlu1 %v1390_v46, %s3264_s23  ;;  %v1985_v46 = vsel %vm1953_vm2, %v3508_v48, %v3811_v30  ;;  %v1768_v44 = vsel %vm575_vm0, %v1763_v24, %v1767_v11 }
  0xd6   : > { %v1022_v12 = vpop.permute.xlu2 %1021  ;;  %1307 = vrot.lane.b32.xlu0 %v1256_v22, %s3265_s24  ;;  %v3944_v0 = vpack.c.b16 %v1062_v39, %v1062_v39  ;;  %v1914_v22 = vsel %vm848_vm1, %v1912_v61, %v1913_v63 }
  0xd7   : > { %v3914_v49 = vsel %vm2019_vm4, %v2000_v36, %v1022_v12  ;;  %v922_v6 = vpop.permute.xlu1 %921  ;;  %v1977_v36 = vsel %vm1953_vm2, %v3414_v21, %v3685_v37  ;;  %v3048_v37 = vld [vmem:[%s3313_s19 + $0x18] sm:$0xf0]  ;;  %v1983_v12 = vsel %vm1953_vm2, %v3164_v32, %v3703_v60 }
  0xd8   : > { %v3923_v1 = vsel %vm1986_vm3, %v1979_v52, %v922_v6  ;;  %v920_v7 = vpop.permute.xlu0 %919  ;;  %v3050_v15 = vor.u32 %v3049_v59, %v3048_v37  ;;  %v1157_v52 = vshll.u32 %v3944_v0, 16  ;;  %v3962_v6 = vld [vmem:[%s3313_s19 + $0x54] sm:$0xff]   ;;  %v1574_v59 = vunpack.c.l.b16 %v2759_v19 }
  0xd9   : > { %v3931_v28 = vsel %vm1986_vm3, %v1977_v36, %v920_v7  ;;  %v3207_v36 = vld [vmem:[%s3313_s19 + $0x24] sm:$0xf0]  ;;  %v1662_v19 = vshrl.u32 %v3962_v6, 16 }
  0xda   : > { %v1364_v60 = vrot.slane %v3050_v15, 1  ;;  %v1159_v10 = vrot.slane %v1157_v52, 1 }
  0xdc   : > { %1811 = vrot.lane.b32.xlu2 %v1720_v42, %s3268_s27  ;;  %v1109_v42 = vshll.u32 %v1074_v43, 16  ;;  %v1366_v61 = vsel %vm848_vm1, %v1364_v60, %v1365_v17  ;;  %v4001_v43 = vpack.c.b16 %v1574_v59, %v1574_v59  ;;  %v1377_v17 = vrot.slane %v3944_v0, 1 }
  0xdd   : > { %1547 = vrot.lane.b32.xlu1 %v3883_v5, %s3266_s25 }
  0xde   : > { %v1028_v21 = vpop.permute.xlu2 %1027  ;;  %1539 = vrot.lane.b32.xlu0 %v3841_v57, %s3266_s25  ;;  %v1902_v57 = vsel %vm848_vm1, %v1900_v55, %v1901_v13  ;;  %v1111_v63 = vrot.slane %v1109_v42, 1  ;;  %v1160_v13 = vsel %vm575_vm0, %v3404_v9, %v1159_v10  ;;  %v2704_v9 = vld [vmem:[%s3313_s19 + $0xbc] sm:$0x1] }
  0xdf   : > { %v3941_v62 = vsel %vm2019_vm4, %v2006_v4, %v1028_v21  ;;  %v928_v5 = vpop.permute.xlu1 %927  ;;  %v3208_v21 = vld [vmem:[%s3313_s19 + $0x24] sm:$0xe]  ;;  %v1071_v42 = vunpack.c.l.b16 %v2704_v9  ;;  %v2823_v9 = vld [vmem:[%s4517_s1 + $0x10] sm:$0xff] }
  0xe0   : > { %v2018_v4 = vsel %vm1986_vm3, %v1985_v46, %v928_v5  ;;  %v926_v48 = vpop.permute.xlu0 %925  ;;  %v3056_v46 = vor.u32 %v3055_v56, %v3054_v8  ;;  %v2225_v5 = vld [vmem:[%s4517_s1 + $0x20] sm:$0xf]  ;;  %v1112_v24 = vsel %vm575_vm0, %v3351_v31, %v1111_v63  ;;  %v3209_v52 = vor.u32 %v3208_v21, %v3207_v36 }
  0xe1   : > { %v3957_v30 = vsel %vm1986_vm3, %v1983_v12, %v926_v48  ;;  %v2247_v11 = vunpack.c.l.b16 %v2225_v5  ;;  %v1669_v8 = vshll.u32 %v4001_v43, 16  ;;  %v1614_v63 = vshrl.u32 %v3970_v58, 16  ;;  %v3211_v5 = vld [vmem:[%s3313_s19 + $0x54] sm:$0xe] }
  0xe2   : > { %v1376_v32 = vrot.slane %v3056_v46, 1  ;;  %v1876_v0 = vrot.slane %v3209_v52, 1  ;;  %v4029_v59 = vpack.c.b16 %v1071_v42, %v1071_v42 }
  0xe3   : > { %v2252_v12 = vpack.c.b16 %v2247_v11, %v2247_v11 }
  0xe4   : > { %1947 = vrot.lane.b32.xlu2 %v1914_v22, %s3267_s26  ;;  %v1664_v22 = vshll.u32 %v3962_v6, 16 }
  0xe5   : > { %1939 = vrot.lane.b32.xlu1 %v1902_v57, %s3267_s26  ;;  %v1616_v57 = vshll.u32 %v3970_v58, 16 }
  0xe6   : > { %v3974_v7 = vpop.permute.xlu2 %1033  ;;  %1819 = vrot.lane.b32.xlu0 %v1768_v44, %s3268_s27  ;;  %v2700_v44 = vld [vmem:[%s3313_s19 + $0x8c] sm:$0x1] }
  0xe7   : > { %v1014_v39 = vpop.permute.xlu1 %1013 }
  0xe8   : > { %v3982_v50 = vsel %vm2019_vm4, %v3847_v25, %v1014_v39  ;;  %v1012_v37 = vpop.permute.xlu0 %1011  ;;  %v1570_v25 = vunpack.c.l.b16 %v2755_v35  ;;  %v1666_v39 = vrot.slane %v1664_v22, 1  ;;  %v1618_v35 = vrot.slane %v1616_v57, 1 }
  0xe9   : > { %v3989_v55 = vsel %vm2019_vm4, %v3735_v41, %v1012_v37  ;;  %v1378_v37 = vsel %vm848_vm1, %v1376_v32, %v1377_v17  ;;  %v1258_v32 = vshrl.u32 %v3677_v16, 16 }
  0xea   : > { %v1586_v31 = vpack.c.b16 %v1570_v25, %v1570_v25  ;;  %v1667_v46 = vor.u32 %v1666_v39, %v1662_v19  ;;  %v1671_v25 = vrot.slane %v1669_v8, 1  ;;  %v1619_v22 = vor.u32 %v1618_v35, %v1614_v63  ;;  %v3217_v39 = vld [vmem:[%s3313_s19 + $0x84] sm:$0xe]  ;;  %v2764_v35 = vld [vmem:[%s3313_s19 + $0x98] sm:$0x1] }
  0xeb   : > { %v1889_v63 = vrot.slane %v4001_v43, 1 }
  0xec   : > { %1411 = vrot.lane.b32.xlu2 %v1366_v61, %s3264_s23  ;;  %v1877_v56 = vrot.slane %v1586_v31, 1  ;;  %v1067_v61 = vunpack.c.l.b16 %v2700_v44  ;;  %v1621_v21 = vshll.u32 %v1586_v31, 16  ;;  %v1672_v31 = vsel %vm575_vm0, %v1667_v46, %v1671_v25 }
  0xed   : > { %1291 = vrot.lane.b32.xlu1 %v1160_v13, %s3265_s24  ;;  %v1210_v44 = vshrl.u32 %v3663_v2, 16 }
  0xee   : > { %v1040_v41 = vpop.permute.xlu2 %1039  ;;  %1283 = vrot.lane.b32.xlu0 %v1112_v24, %s3265_s24  ;;  %v4037_v24 = vpack.c.b16 %v1067_v61, %v1067_v61 }
  0xef   : > { %v4005_v15 = vsel %vm2019_vm4, %v2018_v4, %v1040_v41  ;;  %v1020_v48 = vpop.permute.xlu1 %1019  ;;  %v2292_v4 = vsel %vm2290_vm5, %v2252_v12, 0  ;;  %v1878_v41 = vsel %vm848_vm1, %v1876_v0, %v1877_v56  ;;  %v2768_v56 = vld [vmem:[%s3313_s19 + $0xc8] sm:$0x1] }
  0xf0   : > { %v4012_v60 = vsel %vm2019_vm4, %v3874_v23, %v1020_v48  ;;  %v1018_v10 = vpop.permute.xlu0 %1017  ;;  %3112 = vmatpush.bf16.msra.mxu2 %v2292_v4  ;;  %3113 = vmatpush.bf16.msra.mxu3 %v2292_v4  ;;  %v2824_v23 = vld [vmem:[%s4517_s1 + $0x18] sm:$0xff]  ;;  %v1265_v48 = vshll.u32 %v4029_v59, 16  ;;  %v1217_v42 = vshll.u32 %v4037_v24, 16  ;;  %v1583_v46 = vunpack.c.l.b16 %v2768_v56 }
  0xf1   : > { %v4019_v36 = vsel %vm2019_vm4, %v3747_v20, %v1018_v10  ;;  %2297 = vmatpush.bf16.msra.mxu0 %v2292_v4  ;;  %3111 = vmatpush.bf16.msra.mxu1 %v2292_v4  ;;  %v1260_v20 = vshll.u32 %v3677_v16, 16  ;;  %v2822_v16 = vld [vmem:[%s4517_s1 + $0x8] sm:$0xff]  ;;  %v3214_v4 = vld [vmem:[%s3313_s19 + $0xb4] sm:$0xe] }
  0xf2   : > { %v1267_v19 = vrot.slane %v1265_v48, 1 }
  0xf3   : > { %v1262_v12 = vrot.slane %v1260_v20, 1 }
  0xf4   : > { %1531 = vrot.lane.b32.xlu2 %v3962_v6, %s3266_s25  ;;  %3115 = vmatpush.bf16.msra.mxu2 %v2824_v23  ;;  %v1212_v6 = vshll.u32 %v3663_v2, 16  ;;  %v3212_v2 = vor.u32 %v3211_v5, %v3965_v34  ;;  %v2821_v34 = vld [vmem:[%s4517_s1] sm:$0xff] }
  0xf5   : > { %1523 = vrot.lane.b32.xlu1 %v3970_v58, %s3266_s25  ;;  %3116 = vmatpush.bf16.msra.mxu3 %v2824_v23  ;;  %v1623_v58 = vrot.slane %v1621_v21, 1 }
  0xf6   : > { %v4033_v13 = vpop.permute.xlu2 %1425  ;;  %2298 = vmatpush.bf16.msra.mxu0 %v2824_v23  ;;  %1419 = vrot.lane.b32.xlu0 %v1378_v37, %s3264_s23  ;;  %v1214_v17 = vrot.slane %v1212_v6, 1  ;;  %v1888_v37 = vrot.slane %v3212_v2, 1  ;;  %v3215_v6 = vor.u32 %v3214_v4, %v3680_v47  ;;  %v2692_v47 = vld [vmem:[%s3313_s19 + $0x2c] sm:$0x1]  ;;  %v1392_v4 = vrot.slane %v4037_v24, 1 }
  0xf7   : > { %v4040_v11 = vpop.permute.xlu1 %1025  ;;  %3114 = vmatpush.bf16.msra.mxu1 %v2824_v23  ;;  %v1624_v10 = vsel %vm575_vm0, %v1619_v22, %v1623_v58  ;;  %v1219_v23 = vrot.slane %v1217_v42, 1  ;;  %v3021_v22 = vld [vmem:[%s3313_s19 + $0x90] sm:$0xff]   ;;  %v3218_v58 = vor.u32 %v3217_v39, %v3666_v45 }
  0xf8   : > { %v1024_v57 = vpop.permute.xlu0 %1023  ;;  %3118 = vmatpush.bf16.msra.mxu2 %v2823_v9  ;;  %v1215_v61 = vor.u32 %v1214_v17, %v1210_v44  ;;  %v1403_v48 = vrot.slane %v3215_v6, 1  ;;  %v1270_v44 = vshrl.u32 %v3696_v40, 16 }
  0xf9   : > { %v4051_v52 = vsel %vm2019_vm4, %v3773_v27, %v1024_v57  ;;  %3119 = vmatpush.bf16.msra.mxu3 %v2823_v9  ;;  %v1263_v27 = vor.u32 %v1262_v12, %v1258_v32  ;;  %v4089_v32 = vpack.c.b16 %v1583_v46, %v1583_v46  ;;  %v1724_v12 = vshll.u32 %v3021_v22, 16  ;;  %v3093_v46 = vld [vmem:[%s3313_s19 + $0xc0] sm:$0xf0] }
  0xfa   : > { %2299 = vmatpush.bf16.msra.mxu0 %v2823_v9  ;;  %v1220_v5 = vsel %vm575_vm0, %v1215_v61, %v1219_v23  ;;  %v1404_v57 = vrot.slane %v4029_v59, 1  ;;  %v1391_v42 = vrot.slane %v3218_v58, 1  ;;  %v1722_v59 = vshrl.u32 %v3021_v22, 16 }
  0xfb   : > { %3117 = vmatpush.bf16.msra.mxu1 %v2823_v9  ;;  %v1268_v20 = vsel %vm575_vm0, %v1263_v27, %v1267_v19  ;;  %v1890_v9 = vsel %vm848_vm1, %v1888_v37, %v1889_v63  ;;  %v1059_v27 = vunpack.c.l.b16 %v2692_v47  ;;  %v1726_v39 = vrot.slane %v1724_v12, 1  ;;  %v3088_v47 = vld [vmem:[%s3313_s19 + $0x90] sm:$0xe] }
  0xfc   : > { %1923 = vrot.lane.b32.xlu2 %v1878_v41, %s3267_s26  ;;  %3121 = vmatpush.bf16.msra.mxu2 %v2822_v16  ;;  %v1579_v41 = vunpack.c.l.b16 %v2764_v35  ;;  %v1405_v56 = vsel %vm848_vm1, %v1403_v48, %v1404_v57  ;;  %v1393_v23 = vsel %vm848_vm1, %v1391_v42, %v1392_v4  ;;  %v1114_v37 = vshrl.u32 %v3616_v29, 16  ;;  %v3223_v57 = vld [vmem:[%s3313_s19 + $0x24] sm:$0xe]  ;;  %v2756_v4 = vld [vmem:[%s3313_s19 + $0x38] sm:$0x1] }
  0xfd   : > { %1803 = vrot.lane.b32.xlu1 %v1672_v31, %s3268_s27  ;;  %3122 = vmatpush.bf16.msra.mxu3 %v2822_v16  ;;  %v1727_v35 = vor.u32 %v1726_v39, %v1722_v59 }
  0xfe   : > { %v4064_v8 = vpop.permute.xlu2 %1545  ;;  %2300 = vmatpush.bf16.msra.mxu0 %v2822_v16  ;;  %1795 = vrot.lane.b32.xlu0 %v1624_v10, %s3268_s27  ;;  %v4096_v31 = vpack.c.b16 %v1579_v41, %v1579_v41  ;;  %v1777_v10 = vshll.u32 %v4089_v32, 16 }
  0xff   : > { %v1032_v0 = vpop.permute.xlu1 %1031  ;;  %3120 = vmatpush.bf16.msra.mxu1 %v2822_v16 }
 0x100   : > { %v4075_v21 = vsel %vm2019_vm4, %v3931_v28, %v1032_v0  ;;  %v1030_v25 = vpop.permute.xlu0 %1029  ;;  %3124 = vmatpush.bf16.msra.mxu2 %v2821_v34  ;;  %v1272_v28 = vshll.u32 %v3696_v40, 16  ;;  %v1729_v61 = vshll.u32 %v4096_v31, 16  ;;  %v1779_v0 = vrot.slane %v1777_v10, 1 }
 0x101   : > { %v4080_v43 = vsel %vm2019_vm4, %v3798_v33, %v1030_v25  ;;  %3125 = vmatpush.bf16.msra.mxu3 %v2821_v34  ;;  %v3094_v25 = vld [vmem:[%s3313_s19 + $0xc0] sm:$0xe] }
 0x102   : > { %2301 = vmatpush.bf16.msra.mxu0 %v2821_v34  ;;  %v1274_v17 = vrot.slane %v1272_v28, 1  ;;  %v2696_v28 = vld [vmem:[%s3313_s19 + $0x5c] sm:$0x1]  ;;  %v3095_v48 = vor.u32 %v3094_v25, %v3093_v46 }
 0x103   : > { %3123 = vmatpush.bf16.msra.mxu1 %v2821_v34  ;;  %v1731_v34 = vrot.slane %v1729_v61, 1 }
 0x104   : > { %1309 = vrot.lane.b32.xlu2 %v1268_v20, %s3265_s24  ;;  %v4114_v24 = vor.u32 %v1274_v17, %v1270_v44  ;;  %v1915_v10 = vrot.slane %v3095_v48, 1 }
 0x105   : > { %1301 = vrot.lane.b32.xlu1 %v1220_v5, %s3265_s24  ;;  %v1732_v12 = vsel %vm575_vm0, %v1727_v35, %v1731_v34  ;;  %v4150_v34 = vld [vmem:[%s3313_s19 + $0x30] sm:$0xff]  }
 0x106   : > { %v4092_v33 = vpop.permute.xlu2 %1937  ;;  %1931 = vrot.lane.b32.xlu0 %v1890_v9, %s3267_s26  ;;  %v1780_v5 = vsel %vm575_vm0, %v4114_v24, %v1779_v0  ;;  %v3087_v9 = vld [vmem:[%s3313_s19 + $0x90] sm:$0xf0]  ;;  %v1571_v0 = vunpack.c.l.b16 %v2756_v4  ;;  %v1626_v48 = vshrl.u32 %v4150_v34, 16 }
 0x107   : > { %v1038_v45 = vpop.permute.xlu1 %1037 }
 0x108   : > { %v4102_v16 = vsel %vm2019_vm4, %v3957_v30, %v1038_v45  ;;  %v1036_v19 = vpop.permute.xlu0 %1035  ;;  %v1116_v30 = vshll.u32 %v3616_v29, 16  ;;  %v1063_v29 = vunpack.c.l.b16 %v2696_v28  ;;  %v3089_v45 = vor.u32 %v3088_v47, %v3087_v9 }
 0x109   : > { %v4108_v2 = vsel %vm2019_vm4, %v3823_v53, %v1036_v19  ;;  %v4117_v53 = vpack.c.b16 %v1059_v27, %v1059_v27  ;;  %v1916_v27 = vrot.slane %v4089_v32, 1  ;;  %v1164_v19 = vshll.u32 %v3627_v3, 16 }
 0x10a   : > { %v1118_v6 = vrot.slane %v1116_v30, 1  ;;  %v1079_v39 = vpack.c.b16 %v1063_v29, %v1063_v29  ;;  %v1903_v30 = vrot.slane %v3089_v45, 1  ;;  %v1628_v28 = vshll.u32 %v4150_v34, 16 }
 0x10b   : > { %v1121_v41 = vshll.u32 %v4117_v53, 16  ;;  %v1917_v32 = vsel %vm848_vm1, %v1915_v10, %v1916_v27  ;;  %v1166_v25 = vrot.slane %v1164_v19, 1  ;;  %v1368_v9 = vrot.slane %v4117_v53, 1  ;;  %v3019_v19 = vld [vmem:[%s3313_s19 + $0x60] sm:$0xff]  }
 0x10c   : > { %1541 = vrot.lane.b32.xlu2 %v3021_v22, %s3266_s25  ;;  %v3220_v22 = vld [vmem:[%s3313_s19 + $0x54] sm:$0xe]  ;;  %v1119_v44 = vor.u32 %v1118_v6, %v1114_v37  ;;  %v3224_v37 = vor.u32 %v3223_v57, %v3619_v51  ;;  %v1630_v29 = vrot.slane %v1628_v28, 1 }
 0x10d   : > { %1437 = vrot.lane.b32.xlu1 %v1405_v56, %s3264_s23  ;;  %v1123_v17 = vrot.slane %v1121_v41, 1  ;;  %v3221_v56 = vor.u32 %v3220_v22, %v3630_v38  ;;  %v1380_v38 = vrot.slane %v1079_v39, 1  ;;  %v4160_v41 = vpack.c.b16 %v1571_v0, %v1571_v0 }
 0x10e   : > { %v4120_v63 = vpop.permute.xlu2 %1289  ;;  %1429 = vrot.lane.b32.xlu0 %v1393_v23, %s3264_s23  ;;  %v1904_v23 = vrot.slane %v4096_v31, 1  ;;  %v2037_v31 = vsel %vm2019_vm4, %v3905_v26, %v4040_v11  ;;  %v1367_v22 = vrot.slane %v3224_v37, 1  ;;  %v2705_v37 = vld [vmem:[%s3313_s19 + $0xc8] sm:$0x1] }
 0x10f   : > { %v4123_v20 = vpop.permute.xlu1 %1305  ;;  %v1124_v61 = vsel %vm575_vm0, %v1119_v44, %v1123_v17  ;;  %v1379_v46 = vrot.slane %v3221_v56, 1  ;;  %v1633_v57 = vshll.u32 %v4160_v41, 16  ;;  %v2760_v17 = vld [vmem:[%s3313_s19 + $0x68] sm:$0x1] }
 0x110   : > { %v1298_v58 = vpop.permute.xlu0 %1297  ;;  %v1905_v6 = vsel %vm848_vm1, %v1903_v30, %v1904_v23  ;;  %v1369_v4 = vsel %vm848_vm1, %v1367_v22, %v1368_v9  ;;  %v3082_v30 = vld [vmem:[%s3313_s19 + $0x60] sm:$0xe]  ;;  %v1676_v23 = vshll.u32 %v3019_v19, 16  ;;  %v1674_v22 = vshrl.u32 %v3019_v19, 16 }
 0x111   : > { %v2070_v51 = vsel %vm2052_vm6, %v2037_v31, %v1298_v58  ;;  %v1381_v11 = vsel %vm848_vm1, %v1379_v46, %v1380_v38  ;;  %v1635_v56 = vrot.slane %v1633_v57, 1  ;;  %v2701_v31 = vld [vmem:[%s3313_s19 + $0x98] sm:$0x1]  ;;  %v1880_v57 = vrot.slane %v4160_v41, 1 }
 0x114   : > { %1821 = vrot.lane.b32.xlu2 %v1780_v5, %s3268_s27  ;;  %v1169_v5 = vshll.u32 %v1079_v39, 16  ;;  %v1631_v39 = vor.u32 %v1630_v29, %v1626_v48  ;;  %v3064_v48 = vld [vmem:[%s3313_s19 + $0x90] sm:$0xe] }
 0x115   : > { %1813 = vrot.lane.b32.xlu1 %v1732_v12, %s3268_s27  ;;  %v2103_v12 = vsel %vm2085_vm7, %v2070_v51, %v4033_v13  ;;  %v2045_v13 = vsel %vm2019_vm4, %v3923_v1, %v3974_v7  ;;  %v1072_v51 = vunpack.c.l.b16 %v2705_v37  ;;  %v3069_v37 = vld [vmem:[%s3313_s19 + $0xc0] sm:$0xf0] }
 0x116   : > { %v4139_v42 = vpop.permute.xlu2 %1521  ;;  %1549 = vrot.lane.b32.xlu0 %v3696_v40, %s3266_s25  ;;  %v1162_v40 = vshrl.u32 %v3627_v3, 16  ;;  %v1171_v58 = vrot.slane %v1169_v5, 1 }
 0x117   : > { %v1538_v59 = vpop.permute.xlu1 %1537 }
 0x118   : > { %v1434_v35 = vpop.permute.xlu0 %1433  ;;  %v1167_v47 = vor.u32 %v1166_v25, %v1162_v40  ;;  %v2136_v44 = vsel %vm2118_vm8, %v2103_v12, %v1538_v59  ;;  %v2078_v59 = vsel %vm2052_vm6, %v2045_v13, %v4123_v20  ;;  %v3075_v20 = vld [vmem:[%s3313_s19 + $0x30] sm:$0xf0] }
 0x119   : > { %v2111_v1 = vsel %vm2085_vm7, %v2078_v59, %v1434_v35  ;;  %v1636_v35 = vsel %vm575_vm0, %v1631_v39, %v1635_v56  ;;  %v3063_v12 = vld [vmem:[%s3313_s19 + $0x90] sm:$0xf0]  ;;  %v4224_v59 = vld [vmem:[%s3313_s19 + $0xcc] sm:$0xff]  }
 0x11a   : > { %v1172_v27 = vsel %vm575_vm0, %v1167_v47, %v1171_v58  ;;  %v2144_v40 = vsel %vm2118_vm8, %v2111_v1, %v4064_v8  ;;  %v1678_v8 = vrot.slane %v1676_v23, 1  ;;  %v1068_v58 = vunpack.c.l.b16 %v2701_v31 }
 0x11c   : > { %1285 = vrot.lane.b32.xlu2 %v1124_v61, %s3265_s24  ;;  %v1575_v61 = vunpack.c.l.b16 %v2760_v17  ;;  %v1084_v13 = vpack.c.b16 %v1068_v58, %v1068_v58 }
 0x11d   : > { %1949 = vrot.lane.b32.xlu1 %v1917_v32, %s3267_s26  ;;  %v3076_v32 = vld [vmem:[%s3313_s19 + $0x30] sm:$0xe] }
 0x11e   : > { %v4165_v3 = vpop.permute.xlu2 %1801  ;;  %1941 = vrot.lane.b32.xlu0 %v1905_v6, %s3267_s26  ;;  %v1591_v46 = vpack.c.b16 %v1575_v61, %v1575_v61  ;;  %v3077_v28 = vor.u32 %v3076_v32, %v3075_v20  ;;  %v1395_v61 = vrot.slane %v1084_v13, 1  ;;  %v1229_v1 = vshll.u32 %v1084_v13, 16 }
 0x11f   : > { %v1818_v26 = vpop.permute.xlu1 %1817 }
 0x120   : > { %v1810_v53 = vpop.permute.xlu0 %1809  ;;  %v2177_v25 = vsel %vm2151_vm9, %v2144_v40, %v1818_v26  ;;  %v1681_v47 = vshll.u32 %v1591_v46, 16  ;;  %v1879_v29 = vrot.slane %v3077_v28, 1  ;;  %v3070_v40 = vld [vmem:[%s3313_s19 + $0xc0] sm:$0xe] }
 0x121   : > { %v2169_v45 = vsel %vm2151_vm9, %v2136_v44, %v1810_v53  ;;  %v4215_v44 = vpack.c.b16 %v1072_v51, %v1072_v51  ;;  %v1679_v53 = vor.u32 %v1678_v8, %v1674_v22  ;;  %v3071_v51 = vor.u32 %v3070_v40, %v3069_v37  ;;  %v3229_v40 = vld [vmem:[%s3313_s19 + $0xcc] sm:$0xe] }
 0x122   : > { %v2202_v10 = vsel %vm2184_vm10, %v2169_v45, %v4092_v33  ;;  %v3081_v33 = vld [vmem:[%s3313_s19 + $0x60] sm:$0xf0] }
 0x123   : > { %2810 = vmatmul.msk.bf16.vlgmr.msra.gmra.mxu2 %vm2257_vm11, %v2202_v10  ;;  %v3083_v38 = vor.u32 %v3082_v30, %v3081_v33  ;;  %v3065_v10 = vor.u32 %v3064_v48, %v3063_v12  ;;  %v1277_v41 = vshll.u32 %v4215_v44, 16  ;;  %v4231_v33 = vld [vmem:[%s3313_s19 + $0x9c] sm:$0xff]   ;;  %v1784_v12 = vshll.u32 %v4224_v59, 16 }
 0x124   : > { %1421 = vrot.lane.b32.xlu2 %v1381_v11, %s3264_s23  ;;  %v1892_v11 = vrot.slane %v1591_v46, 1  ;;  %v3225_v30 = vld [vmem:[%s3313_s19 + $0x9c] sm:$0xf0]  ;;  %v1406_v48 = vrot.slane %v3071_v51, 1 }
 0x125   : > { %1413 = vrot.lane.b32.xlu1 %v1369_v4, %s3264_s23  ;;  %v1891_v9 = vrot.slane %v3083_v38, 1  ;;  %v1683_v4 = vrot.slane %v1681_v47, 1  ;;  %v1394_v56 = vrot.slane %v3065_v10, 1  ;;  %v1279_v20 = vrot.slane %v1277_v41, 1 }
 0x126   : > { %v4191_v7 = vpop.permute.xlu2 %1299  ;;  %1293 = vrot.lane.b32.xlu0 %v1172_v27, %s3265_s24  ;;  %v1231_v38 = vrot.slane %v1229_v1, 1 }
 0x127   : > { %v4196_v0 = vpop.permute.xlu1 %1281  ;;  %v1893_v45 = vsel %vm848_vm1, %v1891_v9, %v1892_v11  ;;  %v1684_v39 = vsel %vm575_vm0, %v1679_v53, %v1683_v4  ;;  %v1396_v46 = vsel %vm848_vm1, %v1394_v56, %v1395_v61  ;;  %v1280_v28 = vsel %vm575_vm0, %v4114_v24, %v1279_v20  ;;  %v2697_v24 = vld [vmem:[%s3313_s19 + $0x68] sm:$0x1] }
 0x128   : > { %v1946_v5 = vpop.permute.xlu0 %1945  ;;  %v2054_v11 = vsel %vm2052_vm6, %v3859_v54, %v4196_v0  ;;  %v1064_v10 = vunpack.c.l.b16 %v2697_v24  ;;  %v1734_v61 = vshrl.u32 %v4231_v33, 16  ;;  %v3058_v24 = vld [vmem:[%s3313_s19 + $0x60] sm:$0xe] }
 0x129   : > { %v2210_v6 = vsel %vm2184_vm10, %v2177_v25, %v1946_v5  ;;  %v2765_v25 = vld [vmem:[%s3313_s19 + $0xa4] sm:$0x1]  ;;  %v2062_v5 = vsel %vm2052_vm6, %v4019_v36, %v4120_v63  ;;  %v1232_v36 = vsel %vm575_vm0, %v3521_v18, %v1231_v38  ;;  %v1736_v18 = vshll.u32 %v4231_v33, 16 }
 0x12a   : > { %2814 = vmatmul.msk.bf16.vlgmr.msra.gmra.mxu3 %vm2257_vm11, %v2210_v6  ;;  %v3226_v6 = vld [vmem:[%s3313_s19 + $0x9c] sm:$0xe]  ;;  %v1580_v9 = vunpack.c.l.b16 %v2765_v25  ;;  %v4284_v37 = vpack.c.b16 %v1064_v10, %v1064_v10  ;;  %v3052_v10 = vld [vmem:[%s3313_s19 + $0x30] sm:$0xe] }
 0x12b   : > { %v3227_v13 = vor.u32 %v3226_v6, %v3225_v30  ;;  %v1738_v1 = vrot.slane %v1736_v18, 1  ;;  %v2757_v18 = vld [vmem:[%s3313_s19 + $0x44] sm:$0x1] }
 0x12c   : > { %1797 = vrot.lane.b32.xlu2 %v1636_v35, %s3268_s27  ;;  %v2769_v35 = vld [vmem:[%s3313_s19 + $0xd4] sm:$0x1]  ;;  %v1596_v53 = vpack.c.b16 %v1580_v9, %v1580_v9  ;;  %v4303_v9 = vld [vmem:[%s3313_s19 + $0x3c] sm:$0xf0] }
 0x12d   : > { %1533 = vrot.lane.b32.xlu1 %v3019_v19, %s3266_s25  ;;  %v1881_v19 = vsel %vm848_vm1, %v1879_v29, %v1880_v57  ;;  %v1584_v22 = vunpack.c.l.b16 %v2769_v35  ;;  %v1407_v57 = vrot.slane %v4215_v44, 1  ;;  %v1786_v44 = vrot.slane %v1784_v12, 1 }
 0x12e   : > { %v4210_v26 = vpop.permute.xlu2 %1435  ;;  %1525 = vrot.lane.b32.xlu0 %v4150_v34, %s3266_s25  ;;  %v4227_v34 = vld [vmem:[%s3313_s19 + $0xcc] sm:$0xf0]  ;;  %v1906_v30 = vrot.slane %v3227_v13, 1  ;;  %v1907_v20 = vrot.slane %v1596_v53, 1  ;;  %v1739_v25 = vor.u32 %v1738_v1, %v1734_v61  ;;  %v3051_v13 = vld [vmem:[%s3313_s19 + $0x30] sm:$0xf0] }
 0x12f   : > { %v1418_v17 = vpop.permute.xlu1 %1417  ;;  %v4263_v29 = vpack.c.b16 %v1584_v22, %v1584_v22  ;;  %v3053_v1 = vor.u32 %v3052_v10, %v3051_v13 }
 0x130   : > { %v1410_v27 = vpop.permute.xlu0 %1409  ;;  %v2095_v8 = vsel %vm2085_vm7, %v2062_v5, %v1418_v17  ;;  %v2693_v17 = vld [vmem:[%s3313_s19 + $0x38] sm:$0x1] }
 0x131   : > { %v2087_v63 = vsel %vm2085_vm7, %v2054_v11, %v1410_v27  ;;  %v1060_v56 = vunpack.c.l.b16 %v2693_v17 }
 0x133   : > { %v4289_v38 = vpack.c.b16 %v1060_v56, %v1060_v56 }
 0x134   : > { %1933 = vrot.lane.b32.xlu2 %v1893_v45, %s3267_s26  ;;  %v2120_v45 = vsel %vm2118_vm8, %v2087_v63, %v4139_v42  ;;  %v1408_v42 = vsel %vm848_vm1, %v1406_v48, %v1407_v57  ;;  %v3057_v63 = vld [vmem:[%s3313_s19 + $0x60] sm:$0xf0]  ;;  %v4311_v48 = vld [vmem:[%s3313_s19 + $0x6c] sm:$0xff]  }
 0x135   : > { %1925 = vrot.lane.b32.xlu1 %v1881_v19, %s3267_s26  ;;  %v1133_v22 = vshll.u32 %v4289_v38, 16  ;;  %v4524_v57 = vld [vmem:[#allocation3_spill] sm:$0xff] }
 0x136   : > { %v4235_v23 = vpop.permute.xlu2 %1811  ;;  %1805 = vrot.lane.b32.xlu0 %v1684_v39, %s3268_s27  ;;  %v1789_v39 = vshll.u32 %v4263_v29, 16 }
 0x137   : > { %v1794_v32 = vpop.permute.xlu1 %1793  ;;  %v1135_v12 = vrot.slane %v1133_v22, 1 }
 0x138   : > { %v1530_v31 = vpop.permute.xlu0 %1529  ;;  %v2153_v27 = vsel %vm2151_vm9, %v2120_v45, %v1794_v32  ;;  %v1741_v32 = vshll.u32 %v1596_v53, 16  ;;  %v3059_v45 = vor.u32 %v3058_v24, %v3057_v63 }
 0x139   : > { %v2128_v47 = vsel %vm2118_vm8, %v2095_v8, %v1530_v31  ;;  %v1908_v31 = vsel %vm848_vm1, %v1906_v30, %v1907_v20  ;;  %v4300_v8 = vld [vmem:[%s3313_s19 + $0x3c] sm:$0xff]  }
 0x13a   : > { %v2161_v0 = vsel %vm2151_vm9, %v2128_v47, %v4165_v3  ;;  %v1782_v3 = vshrl.u32 %v4224_v59, 16  ;;  %v1743_v6 = vrot.slane %v1741_v32, 1  ;;  %v1382_v61 = vrot.slane %v3059_v45, 1 }
 0x13b   : > { %v1640_v32 = vshll.u32 %v4300_v8, 16 }
 0x13c   : > { %1431 = vrot.lane.b32.xlu2 %v1396_v46, %s3264_s23  ;;  %v1787_v35 = vor.u32 %v1786_v44, %v1782_v3  ;;  %v1791_v46 = vrot.slane %v1789_v39, 1  ;;  %v1744_v11 = vsel %vm575_vm0, %v1739_v25, %v1743_v6  ;;  %v4525_v3 = vld [vmem:[#allocation2_spill] sm:$0xff]  ;;  %v1572_v44 = vunpack.c.l.b16 %v2757_v18  ;;  %v2761_v39 = vld [vmem:[%s3313_s19 + $0x74] sm:$0x1] }
 0x13d   : > { %1311 = vrot.lane.b32.xlu1 %v1280_v28, %s3265_s24  ;;  %v1576_v30 = vunpack.c.l.b16 %v2761_v39  ;;  %v1370_v25 = vrot.slane %v3053_v1, 1  ;;  %v1642_v22 = vrot.slane %v1640_v32, 1 }
 0x13e   : > { %v4260_v58 = vpop.permute.xlu2 %1947  ;;  %1303 = vrot.lane.b32.xlu0 %v1232_v36, %s3265_s24  ;;  %v1792_v51 = vsel %vm575_vm0, %v1787_v35, %v1791_v46  ;;  %v3230_v36 = vor.u32 %v3229_v40, %v4227_v34  ;;  %v1919_v34 = vrot.slane %v4263_v29, 1  ;;  %v1588_v20 = vpack.c.b16 %v1572_v44, %v1572_v44 }
 0x13f   : > { %v1930_v54 = vpop.permute.xlu1 %1929  ;;  %v1688_v46 = vshll.u32 %v4311_v48, 16 }
 0x140   : > { %v2194_v4 = vsel %vm2184_vm10, %v2161_v0, %v1930_v54  ;;  %v1922_v19 = vpop.permute.xlu0 %1921  ;;  %v4314_v54 = vld [vmem:[%s3313_s19 + $0x6c] sm:$0xf0]  ;;  %v1918_v17 = vrot.slane %v3230_v36, 1  ;;  %v1883_v39 = vrot.slane %v1588_v20, 1 }
 0x141   : > { %2806 = vmatmul.msk.bf16.vlgmr.msra.gmra.mxu1 %vm2257_vm11, %v2194_v4  ;;  %v2186_v41 = vsel %vm2184_vm10, %v2153_v27, %v1922_v19  ;;  %v2072_v27 = vsel %vm2052_vm6, %v3941_v62, %v4191_v7  ;;  %v1383_v7 = vrot.slane %v4284_v37, 1  ;;  %v1690_v36 = vrot.slane %v1688_v46, 1 }
 0x142   : > { %2802 = vmatmul.msk.bf16.vlgmr.msra.gmra.mxu0 %vm2257_vm11, %v2186_v41  ;;  %v1136_v41 = vsel %vm575_vm0, %v4525_v3, %v1135_v12 }
 0x144   : > { %1551 = vrot.lane.b32.xlu2 %v4224_v59, %s3266_s25 }
 0x145   : > { %1543 = vrot.lane.b32.xlu1 %v4231_v33, %s3266_s25  ;;  %v1181_v33 = vshll.u32 %v4284_v37, 16  ;;  %v1371_v37 = vrot.slane %v4289_v38, 1  ;;  %v1686_v38 = vshrl.u32 %v4311_v48, 16 }
 0x146   : > { %1439 = vrot.lane.b32.xlu0 %v1408_v42, %s3264_s23  ;;  %v4292_v5 = vpop.permute.xlu2 %1411  ;;  %v1920_v42 = vsel %vm848_vm1, %v1918_v17, %v1919_v34 }
 0x147   : > { %v1428_v59 = vpop.permute.xlu1 %1427  ;;  %v1183_v47 = vrot.slane %v1181_v33, 1  ;;  %v1384_v33 = vsel %vm848_vm1, %v1382_v61, %v1383_v7  ;;  %v1372_v12 = vsel %vm848_vm1, %v1370_v25, %v1371_v37  ;;  %v1691_v18 = vor.u32 %v1690_v36, %v1686_v38 }
 0x148   : > { %v1308_v28 = vpop.permute.xlu0 %1307  ;;  %v2105_v56 = vsel %vm2085_vm7, %v2072_v27, %v1428_v59 }
 0x149   : > { %v1184_v53 = vsel %vm575_vm0, %v4524_v57, %v1183_v47  ;;  %v2080_v62 = vsel %vm2052_vm6, %v4108_v2, %v1308_v28  ;;  %v3232_v47 = vld [vmem:[%s3313_s19 + $0x6c] sm:$0xe] }
 0x14a   : > { %v2113_v2 = vsel %vm2085_vm7, %v2080_v62, %v4210_v26  ;;  %v1645_v26 = vshll.u32 %v1588_v20, 16 }
 0x14c   : > { %1943 = vrot.lane.b32.xlu2 %v1908_v31, %s3267_s26 }
 0x14d   : > { %1823 = vrot.lane.b32.xlu1 %v1792_v51, %s3268_s27  ;;  %v1638_v51 = vshrl.u32 %v4300_v8, 16 }
 0x14e   : > { %1815 = vrot.lane.b32.xlu0 %v1744_v11, %s3268_s27  ;;  %v4326_v19 = vpop.permute.xlu2 %1531 }
 0x14f   : > { %v1548_v0 = vpop.permute.xlu1 %1547 }
 0x150   : > { %v1540_v4 = vpop.permute.xlu0 %1539  ;;  %v2146_v31 = vsel %vm2118_vm8, %v2113_v2, %v1548_v0  ;;  %v3235_v0 = vld [vmem:[%s3313_s19 + $0x3c] sm:$0xe] }
 0x151   : > { %v2138_v29 = vsel %vm2118_vm8, %v2105_v56, %v1540_v4  ;;  %v3233_v4 = vor.u32 %v3232_v47, %v4314_v54  ;;  %v3236_v13 = vor.u32 %v3235_v0, %v4303_v9 }
 0x152   : > { %v2171_v35 = vsel %vm2151_vm9, %v2138_v29, %v4235_v23  ;;  %v1592_v23 = vpack.c.b16 %v1576_v30, %v1576_v30 }
 0x153   : > { %v1894_v27 = vrot.slane %v3233_v4, 1  ;;  %v1882_v44 = vrot.slane %v3236_v13, 1  ;;  %v4417_v13 = vld [vmem:[%s4518_s2] ss:$0 sm:$0xff] }
 0x154   : > { %1295 = vrot.lane.b32.xlu2 %v1184_v53, %s3265_s24  ;;  %v1693_v63 = vshll.u32 %v1592_v23, 16  ;;  %v1643_v53 = vor.u32 %v1642_v22, %v1638_v51  ;;  %v1895_v3 = vrot.slane %v1592_v23, 1 }
 0x155   : > { %1287 = vrot.lane.b32.xlu1 %v1136_v41, %s3265_s24  ;;  %v1884_v54 = vsel %vm848_vm1, %v1882_v44, %v1883_v39 }
 0x156   : > { %1951 = vrot.lane.b32.xlu0 %v1920_v42, %s3267_s26  ;;  %v1924_v24 = vpop.permute.xlu2 %1923  ;;  %v1695_v57 = vrot.slane %v1693_v63, 1  ;;  %v1896_v29 = vsel %vm848_vm1, %v1894_v27, %v1895_v3 }
 0x157   : > { %v1940_v40 = vpop.permute.xlu1 %1939 }
 0x158   : > { %v2204_v59 = vsel %vm2184_vm10, %v2171_v35, %v1940_v40  ;;  %v1820_v6 = vpop.permute.xlu0 %1819 }
 0x159   : > { %2811 = vmatmul.msk.bf16.gmra.mxu2 %vm2257_vm11, %v2204_v59  ;;  %v2179_v28 = vsel %vm2151_vm9, %v2146_v31, %v1820_v6 }
 0x15a   : > { %v2212_v11 = vsel %vm2184_vm10, %v2179_v28, %v4260_v58  ;;  %v1647_v58 = vrot.slane %v1645_v26, 1 }
 0x15b   : > { %2815 = vmatmul.msk.bf16.gmra.mxu3 %vm2257_vm11, %v2212_v11 }
 0x15c   : > { %1527 = vrot.lane.b32.xlu2 %v4300_v8, %s3266_s25  ;;  %v1696_v8 = vsel %vm575_vm0, %v1691_v18, %v1695_v57  ;;  %v1648_v45 = vsel %vm575_vm0, %v1643_v53, %v1647_v58 }
 0x15d   : > { %1423 = vrot.lane.b32.xlu1 %v1384_v33, %s3264_s23 }
 0x15e   : > { %1415 = vrot.lane.b32.xlu0 %v1372_v12, %s3264_s23  ;;  %v1310_v10 = vpop.permute.xlu2 %1309 }
 0x15f   : > { %v1292_v17 = vpop.permute.xlu1 %1291  ;;  %v2082_v6 = vsel %vm2052_vm6, %v4102_v16, %v1310_v10 }
 0x160   : > { %v1284_v34 = vpop.permute.xlu0 %1283  ;;  %v2064_v20 = vsel %vm2052_vm6, %v4012_v60, %v1292_v17 }
 0x161   : > { %v2056_v42 = vsel %vm2052_vm6, %v3989_v55, %v1284_v34 }
 0x164   : > { %1807 = vrot.lane.b32.xlu2 %v1696_v8, %s3268_s27 }
 0x165   : > { %1799 = vrot.lane.b32.xlu1 %v1648_v45, %s3268_s27 }
 0x166   : > { %1535 = vrot.lane.b32.xlu0 %v4311_v48, %s3266_s25  ;;  %v1542_v61 = vpop.permute.xlu2 %1541  ;;  %v2089_v48 = vsel %vm2085_vm7, %v2056_v42, %v4292_v5 }
 0x167   : > { %v1524_v41 = vpop.permute.xlu1 %1523 }
 0x168   : > { %v1420_v56 = vpop.permute.xlu0 %1419  ;;  %v2122_v1 = vsel %vm2118_vm8, %v2089_v48, %v1524_v41 }
 0x169   : > { %v2097_v55 = vsel %vm2085_vm7, %v2064_v20, %v1420_v56 }
 0x16a   : > { %v2130_v40 = vsel %vm2118_vm8, %v2097_v55, %v4326_v19 }
 0x16d   : > { %1935 = vrot.lane.b32.xlu1 %v1896_v29, %s3267_s26 }
 0x16e   : > { %1927 = vrot.lane.b32.xlu0 %v1884_v54, %s3267_s26  ;;  %v1822_v46 = vpop.permute.xlu2 %1821 }
 0x16f   : > { %v1804_v9 = vpop.permute.xlu1 %1803 }
 0x170   : > { %v1796_v62 = vpop.permute.xlu0 %1795  ;;  %v2163_v5 = vsel %vm2151_vm9, %v2130_v40, %v1804_v9 }
 0x171   : > { %v2155_v7 = vsel %vm2151_vm9, %v2122_v1, %v1796_v62 }
 0x172   : > { %v2188_v30 = vsel %vm2184_vm10, %v2155_v7, %v1924_v24 }
 0x173   : > { %2803 = vmatmul.msk.bf16.gmra.mxu0 %vm2257_vm11, %v2188_v30 }
 0x176   : > { %v1286_v37 = vpop.permute.xlu2 %1285 }
 0x177   : > { %v1302_v32 = vpop.permute.xlu1 %1301  ;;  %v2058_v18 = vsel %vm2052_vm6, %v3982_v50, %v1286_v37 }
 0x178   : > { %v1932_v35 = vpop.permute.xlu0 %1931  ;;  %v2074_v19 = vsel %vm2052_vm6, %v4080_v43, %v1302_v32 }
 0x179   : > { %v2196_v2 = vsel %vm2184_vm10, %v2163_v5, %v1932_v35 }
 0x17a   : > { %2807 = vmatmul.msk.bf16.gmra.mxu1 %vm2257_vm11, %v2196_v2 }
 0x17e   : > { %v1422_v51 = vpop.permute.xlu2 %1421 }
 0x17f   : > { %v1438_v59 = vpop.permute.xlu1 %1437 }
 0x180   : > { %v1430_v25 = vpop.permute.xlu0 %1429  ;;  %v2115_v33 = vsel %vm2085_vm7, %v2082_v6, %v1438_v59 }
 0x181   : > { %v2107_v28 = vsel %vm2085_vm7, %v2074_v19, %v1430_v25 }
 0x182   : > { %v2140_v11 = vsel %vm2118_vm8, %v2107_v28, %v1542_v61 }
 0x186   : > { %v1798_v63 = vpop.permute.xlu2 %1797 }
 0x187   : > { %v1814_v60 = vpop.permute.xlu1 %1813 }
 0x188   : > { %v1550_v31 = vpop.permute.xlu0 %1549  ;;  %v2173_v38 = vsel %vm2151_vm9, %v2140_v11, %v1814_v60 }
 0x189   : > { %v2148_v23 = vsel %vm2118_vm8, %v2115_v33, %v1550_v31 }
 0x18a   : > { %v2181_v26 = vsel %vm2151_vm9, %v2148_v23, %v1822_v46 }
 0x18e   : > { %v1934_v57 = vpop.permute.xlu2 %1933 }
 0x18f   : > { %v1950_v22 = vpop.permute.xlu1 %1949 }
 0x190   : > { %v2214_v47 = vsel %vm2184_vm10, %v2181_v26, %v1950_v22  ;;  %v1942_v16 = vpop.permute.xlu0 %1941 }
 0x191   : > { %2816 = vmatmul.msk.bf16.gmra.mxu3 %vm2257_vm11, %v2214_v47  ;;  %v2206_v36 = vsel %vm2184_vm10, %v2173_v38, %v1942_v16 }
 0x192   : > { %2812 = vmatmul.msk.bf16.gmra.mxu2 %vm2257_vm11, %v2206_v36 }
 0x196   : > { %v1432_v41 = vpop.permute.xlu2 %1431 }
 0x197   : > { %v1414_v43 = vpop.permute.xlu1 %1413 }
 0x198   : > { %v1294_v24 = vpop.permute.xlu0 %1293  ;;  %v2091_v53 = vsel %vm2085_vm7, %v2058_v18, %v1414_v43 }
 0x199   : > { %v2066_v17 = vsel %vm2052_vm6, %v3914_v49, %v1294_v24 }
 0x19a   : > { %v2099_v4 = vsel %vm2085_vm7, %v2066_v17, %v1422_v51 }
 0x19e   : > { %v1552_v7 = vpop.permute.xlu2 %1551 }
 0x19f   : > { %v1534_v12 = vpop.permute.xlu1 %1533 }
 0x1a0   : > { %v1526_v0 = vpop.permute.xlu0 %1525  ;;  %v2132_v10 = vsel %vm2118_vm8, %v2099_v4, %v1534_v12 }
 0x1a1   : > { %v2124_v58 = vsel %vm2118_vm8, %v2091_v53, %v1526_v0 }
 0x1a2   : > { %v2157_v45 = vsel %vm2151_vm9, %v2124_v58, %v1798_v63 }
 0x1a6   : > { %v2343_v8 = vpop.f32.mrf.mxu2  ;;  %v1944_v31 = vpop.permute.xlu2 %1943 }
 0x1a7   : > { %v1926_v34 = vpop.permute.xlu1 %1925  ;;  %v2344_v44 = vadd.f32 %v4417_v13, %v2343_v8 }
 0x1a8   : > { %v2190_v50 = vsel %vm2184_vm10, %v2157_v45, %v1926_v34  ;;  %v1806_v27 = vpop.permute.xlu0 %1805 }
 0x1a9   : > { %2804 = vmatmul.msk.bf16.gmra.mxu0 %vm2257_vm11, %v2190_v50  ;;  %v2165_v49 = vsel %vm2151_vm9, %v2132_v10, %v1806_v27  ;;  %v2399_v54 = vmax.f32 %v2344_v44, 0.0 }
 0x1aa   : > { %v2198_v3 = vsel %vm2184_vm10, %v2165_v49, %v1934_v57 }
 0x1ab   : > { %2808 = vmatmul.msk.bf16.gmra.mxu1 %vm2257_vm11, %v2198_v3  ;;  %v2431_v1 = vmin.f32 %v2399_v54, 6.0 }
 0x1ad   : > { %v2363_v39 = vpop.f32.mrf.mxu3 }
 0x1ae   : > { %v2345_v56 = vpop.f32.mrf.mxu2  ;;  %v2364_v48 = vadd.f32 %v4417_v13, %v2363_v39  ;;  %v1296_v57 = vpop.permute.xlu2 %1295 }
 0x1af   : > { %v1312_v29 = vpop.permute.xlu1 %1311  ;;  %v2346_v42 = vadd.f32 %v4417_v13, %v2345_v56  ;;  %v2068_v44 = vsel %vm2052_vm6, %v4051_v52, %v1296_v57 }
 0x1b0   : > { %v1304_v9 = vpop.permute.xlu0 %1303  ;;  %v2407_v55 = vmax.f32 %v2364_v48, 0.0 }
 0x1b1   : > { %v2400_v61 = vmax.f32 %v2346_v42, 0.0  ;;  %v2076_v59 = vsel %vm2052_vm6, %v4075_v21, %v1304_v9  ;;  %v2084_v21 = vsel %vm2052_vm6, %v4005_v15, %v1312_v29 }
 0x1b2   : > { %v2439_v46 = vmin.f32 %v2407_v55, 6.0  ;;  %v2109_v6 = vsel %vm2085_vm7, %v2076_v59, %v1432_v41 }
 0x1b3   : > { %v2432_v62 = vmin.f32 %v2400_v61, 6.0 }
 0x1b5   : > { %v2964_v30 = vpack.c.bf16 %v2432_v62, %v2431_v1  ;;  %v2365_v20 = vpop.f32.mrf.mxu3 }
 0x1b6   : > { %v2366_v32 = vadd.f32 %v4417_v13, %v2365_v20  ;;  %v1528_v49 = vpop.permute.xlu2 %1527 }
 0x1b7   : > { %v1544_v40 = vpop.permute.xlu1 %1543  ;;  %3103 = vst [vmem:[%s4432_s20 + $0x40] sm:$0xff] %v2964_v30  }
 0x1b8   : > { %v2408_v5 = vmax.f32 %v2366_v32, 0.0  ;;  %v1440_v35 = vpop.permute.xlu0 %1439  ;;  %v2142_v19 = vsel %vm2118_vm8, %v2109_v6, %v1544_v40 }
 0x1b9   : > { %v2117_v26 = vsel %vm2085_vm7, %v2084_v21, %v1440_v35 }
 0x1ba   : > { %v2440_v2 = vmin.f32 %v2408_v5, 6.0  ;;  %v2150_v43 = vsel %vm2118_vm8, %v2117_v26, %v1552_v7 }
 0x1bc   : > { %v2984_v25 = vpack.c.bf16 %v2440_v2, %v2439_v46 }
 0x1be   : > { %v2323_v37 = vpop.f32.mrf.mxu1  ;;  %3107 = vst [vmem:[%s4432_s20 + $0x60] sm:$0xff] %v2984_v25   ;;  %v1808_v54 = vpop.permute.xlu2 %1807 }
 0x1bf   : > { %v1824_v60 = vpop.permute.xlu1 %1823  ;;  %v2303_v33 = vpop.f32.mrf.mxu0  ;;  %v2324_v51 = vadd.f32 %v4417_v13, %v2323_v37 }
 0x1c0   : > { %v1816_v23 = vpop.permute.xlu0 %1815  ;;  %v2304_v11 = vadd.f32 %v4417_v13, %v2303_v33  ;;  %v2183_v12 = vsel %vm2151_vm9, %v2150_v43, %v1824_v60 }
 0x1c1   : > { %v2175_v28 = vsel %vm2151_vm9, %v2142_v19, %v1816_v23  ;;  %v2391_v38 = vmax.f32 %v2324_v51, 0.0 }
 0x1c2   : > { %v2208_v22 = vsel %vm2184_vm10, %v2175_v28, %v1944_v31  ;;  %v2383_v24 = vmax.f32 %v2304_v11, 0.0 }
 0x1c3   : > { %2813 = vmatmul.msk.bf16.gmra.mxu2 %vm2257_vm11, %v2208_v22  ;;  %v2423_v58 = vmin.f32 %v2391_v38, 6.0 }
 0x1c4   : > { %v2415_v34 = vmin.f32 %v2383_v24, 6.0 }
 0x1c6   : > { %v2325_v47 = vpop.f32.mrf.mxu1 }
 0x1c7   : > { %v2326_v16 = vadd.f32 %v4417_v13, %v2325_v47  ;;  %v1288_v36 = vpop.permute.xlu1 %1287  ;;  %v2305_v63 = vpop.f32.mrf.mxu0 }
 0x1c8   : > { %v2306_v15 = vadd.f32 %v4417_v13, %v2305_v63  ;;  %v1952_v18 = vpop.permute.xlu0 %1951  ;;  %v2060_v56 = vsel %vm2052_vm6, %v3891_v14, %v1288_v36 }
 0x1c9   : > { %v2392_v0 = vmax.f32 %v2326_v16, 0.0  ;;  %v2216_v53 = vsel %vm2184_vm10, %v2183_v12, %v1952_v18 }
 0x1ca   : > { %v2384_v17 = vmax.f32 %v2306_v15, 0.0  ;;  %2817 = vmatmul.msk.bf16.gmra.mxu3 %vm2257_vm11, %v2216_v53 }
 0x1cb   : > { %v2424_v8 = vmin.f32 %v2392_v0, 6.0 }
 0x1cc   : > { %v2416_v45 = vmin.f32 %v2384_v17, 6.0 }
 0x1cd   : > { %v2944_v4 = vpack.c.bf16 %v2424_v8, %v2423_v58 }
 0x1ce   : > { %v2924_v50 = vpack.c.bf16 %v2416_v45, %v2415_v34 }
 0x1cf   : > { %3099 = vst [vmem:[%s4432_s20 + $0x20] sm:$0xff] %v2944_v4   ;;  %v1424_v10 = vpop.permute.xlu1 %1423 }
 0x1d0   : > { %2925 = vst [vmem:[%s4432_s20] sm:$0xff] %v2924_v50   ;;  %v1416_v27 = vpop.permute.xlu0 %1415  ;;  %v2101_v39 = vsel %vm2085_vm7, %v2068_v44, %v1424_v10 }
 0x1d1   : > { %v2093_v9 = vsel %vm2085_vm7, %v2060_v56, %v1416_v27 }
 0x1d2   : > { %v2126_v62 = vsel %vm2118_vm8, %v2093_v9, %v1528_v49 }
 0x1d7   : > { %v1800_v3 = vpop.permute.xlu1 %1799 }
 0x1d8   : > { %v1536_v41 = vpop.permute.xlu0 %1535  ;;  %v2159_v52 = vsel %vm2151_vm9, %v2126_v62, %v1800_v3 }
 0x1d9   : > { %v2134_v29 = vsel %vm2118_vm8, %v2101_v39, %v1536_v41 }
 0x1da   : > { %v2167_v61 = vsel %vm2151_vm9, %v2134_v29, %v1808_v54 }
 0x1dc   : > { %v2348_v42 = vpop.f32.mrf.mxu2 }
 0x1dd   : > { %v2349_v30 = vadd.f32 %v4417_v13, %v2348_v42 }
 0x1de   : > { %v2368_v48 = vpop.f32.mrf.mxu3 }
 0x1df   : > { %v1936_v1 = vpop.permute.xlu1 %1935  ;;  %v2369_v55 = vadd.f32 %v4417_v13, %v2368_v48  ;;  %v2401_v40 = vmax.f32 %v2349_v30, 0.0 }
 0x1e0   : > { %v2200_v7 = vsel %vm2184_vm10, %v2167_v61, %v1936_v1  ;;  %v1928_v20 = vpop.permute.xlu0 %1927 }
 0x1e1   : > { %2809 = vmatmul.msk.bf16.gmra.mxu1 %vm2257_vm11, %v2200_v7  ;;  %v2192_v14 = vsel %vm2184_vm10, %v2159_v52, %v1928_v20  ;;  %v2409_v2 = vmax.f32 %v2369_v55, 0.0  ;;  %v2433_v25 = vmin.f32 %v2401_v40, 6.0 }
 0x1e2   : > { %2805 = vmatmul.msk.bf16.gmra.mxu0 %vm2257_vm11, %v2192_v14 }
 0x1e3   : > { %v2441_v6 = vmin.f32 %v2409_v2, 6.0 }
 0x1e4   : > { %v2350_v32 = vpop.f32.mrf.mxu2 }
 0x1e5   : > { %v2351_v5 = vadd.f32 %v4417_v13, %v2350_v32 }
 0x1e6   : > { %v2370_v46 = vpop.f32.mrf.mxu3 }
 0x1e7   : > { %v2402_v35 = vmax.f32 %v2351_v5, 0.0  ;;  %v2371_v59 = vadd.f32 %v4417_v13, %v2370_v46 }
 0x1e9   : > { %v2434_v37 = vmin.f32 %v2402_v35, 6.0  ;;  %v2410_v60 = vmax.f32 %v2371_v59, 0.0 }
 0x1eb   : > { %v2969_v31 = vpack.c.bf16 %v2434_v37, %v2433_v25  ;;  %v2442_v33 = vmin.f32 %v2410_v60, 6.0 }
 0x1ed   : > { %3104 = vst [vmem:[%s4432_s20 + $0x48] sm:$0xff] %v2969_v31   ;;  %v2989_v19 = vpack.c.bf16 %v2442_v33, %v2441_v6 }
 0x1ef   : > { %3108 = vst [vmem:[%s4432_s20 + $0x68] sm:$0xff] %v2989_v19  }
 0x1f0   : > { %v2308_v23 = vpop.f32.mrf.mxu0 }
 0x1f1   : > { %v2309_v28 = vadd.f32 %v4417_v13, %v2308_v23 }
 0x1f3   : > { %v2385_v21 = vmax.f32 %v2309_v28, 0.0 }
 0x1f5   : > { %v2417_v38 = vmin.f32 %v2385_v21, 6.0 }
 0x1f7   : > { %v2328_v51 = vpop.f32.mrf.mxu1 }
 0x1f8   : > { %v2310_v22 = vpop.f32.mrf.mxu0  ;;  %v2329_v47 = vadd.f32 %v4417_v13, %v2328_v51 }
 0x1f9   : > { %v2311_v26 = vadd.f32 %v4417_v13, %v2310_v22 }
 0x1fa   : > { %v2393_v63 = vmax.f32 %v2329_v47, 0.0 }
 0x1fb   : > { %v2386_v11 = vmax.f32 %v2311_v26, 0.0 }
 0x1fc   : > { %v2425_v15 = vmin.f32 %v2393_v63, 6.0 }
 0x1fd   : > { %v2418_v16 = vmin.f32 %v2386_v11, 6.0 }
 0x1ff   : > { %v2929_v36 = vpack.c.bf16 %v2418_v16, %v2417_v38  ;;  %v2330_v43 = vpop.f32.mrf.mxu1 }
 0x200   : > { %v2331_v24 = vadd.f32 %v4417_v13, %v2330_v43 }
 0x201   : > { %3096 = vst [vmem:[%s4432_s20 + $0x8] sm:$0xff] %v2929_v36  }
 0x202   : > { %v2394_v12 = vmax.f32 %v2331_v24, 0.0 }
 0x204   : > { %v2426_v0 = vmin.f32 %v2394_v12, 6.0 }
 0x206   : > { %v2949_v18 = vpack.c.bf16 %v2426_v0, %v2425_v15 }
 0x208   : > { %3100 = vst [vmem:[%s4432_s20 + $0x28] sm:$0xff] %v2949_v18  }
 0x214   : > { %v2373_v57 = vpop.f32.mrf.mxu3 }
 0x215   : > { %v2353_v53 = vpop.f32.mrf.mxu2  ;;  %v2374_v58 = vadd.f32 %v4417_v13, %v2373_v57 }
 0x216   : > { %v2354_v17 = vadd.f32 %v4417_v13, %v2353_v53 }
 0x217   : > { %v2411_v34 = vmax.f32 %v2374_v58, 0.0 }
 0x218   : > { %v2403_v50 = vmax.f32 %v2354_v17, 0.0 }
 0x219   : > { %v2443_v49 = vmin.f32 %v2411_v34, 6.0 }
 0x21a   : > { %v2435_v44 = vmin.f32 %v2403_v50, 6.0 }
 0x21c   : > { %v2375_v8 = vpop.f32.mrf.mxu3 }
 0x21d   : > { %v2376_v45 = vadd.f32 %v4417_v13, %v2375_v8  ;;  %v2355_v4 = vpop.f32.mrf.mxu2 }
 0x21e   : > { %v2356_v10 = vadd.f32 %v4417_v13, %v2355_v4 }
 0x21f   : > { %v2412_v27 = vmax.f32 %v2376_v45, 0.0 }
 0x220   : > { %v2404_v3 = vmax.f32 %v2356_v10, 0.0 }
 0x221   : > { %v2444_v41 = vmin.f32 %v2412_v27, 6.0 }
 0x222   : > { %v2436_v39 = vmin.f32 %v2404_v3, 6.0 }
 0x223   : > { %v2994_v56 = vpack.c.bf16 %v2444_v41, %v2443_v49 }
 0x224   : > { %v2974_v29 = vpack.c.bf16 %v2436_v39, %v2435_v44 }
 0x225   : > { %3109 = vst [vmem:[%s4432_s20 + $0x70] sm:$0xff] %v2994_v56  }
 0x226   : > { %v2313_v54 = vpop.f32.mrf.mxu0  ;;  %3105 = vst [vmem:[%s4432_s20 + $0x50] sm:$0xff] %v2974_v29  }
 0x227   : > { %v2314_v9 = vadd.f32 %v4417_v13, %v2313_v54 }
 0x228   : > { %v2333_v42 = vpop.f32.mrf.mxu1 }
 0x229   : > { %v2334_v61 = vadd.f32 %v4417_v13, %v2333_v42  ;;  %v2387_v1 = vmax.f32 %v2314_v9, 0.0 }
 0x22b   : > { %v2395_v30 = vmax.f32 %v2334_v61, 0.0  ;;  %v2419_v14 = vmin.f32 %v2387_v1, 6.0 }
 0x22d   : > { %v2427_v5 = vmin.f32 %v2395_v30, 6.0 }
 0x22e   : > { %v2315_v48 = vpop.f32.mrf.mxu0 }
 0x22f   : > { %v2316_v62 = vadd.f32 %v4417_v13, %v2315_v48 }
 0x230   : > { %v2335_v52 = vpop.f32.mrf.mxu1 }
 0x231   : > { %v2388_v7 = vmax.f32 %v2316_v62, 0.0  ;;  %v2336_v20 = vadd.f32 %v4417_v13, %v2335_v52 }
 0x233   : > { %v2420_v55 = vmin.f32 %v2388_v7, 6.0  ;;  %v2396_v32 = vmax.f32 %v2336_v20, 0.0 }
 0x235   : > { %v2934_v40 = vpack.c.bf16 %v2420_v55, %v2419_v14  ;;  %v2428_v35 = vmin.f32 %v2396_v32, 6.0 }
 0x237   : > { %3097 = vst [vmem:[%s4432_s20 + $0x10] sm:$0xff] %v2934_v40   ;;  %v2954_v46 = vpack.c.bf16 %v2428_v35, %v2427_v5 }
 0x239   : > { %3101 = vst [vmem:[%s4432_s20 + $0x30] sm:$0xff] %v2954_v46  }
 0x246   : > { %v2358_v2 = vpop.f32.mrf.mxu2 }
 0x247   : > { %v2359_v59 = vadd.f32 %v4417_v13, %v2358_v2 }
 0x249   : > { %v2405_v60 = vmax.f32 %v2359_v59, 0.0 }
 0x24b   : > { %v2437_v19 = vmin.f32 %v2405_v60, 6.0 }
 0x24d   : > { %v2378_v25 = vpop.f32.mrf.mxu3 }
 0x24e   : > { %v2360_v37 = vpop.f32.mrf.mxu2  ;;  %v2379_v33 = vadd.f32 %v4417_v13, %v2378_v25 }
 0x24f   : > { %v2361_v31 = vadd.f32 %v4417_v13, %v2360_v37 }
 0x250   : > { %v2413_v22 = vmax.f32 %v2379_v33, 0.0 }
 0x251   : > { %v2406_v6 = vmax.f32 %v2361_v31, 0.0 }
 0x252   : > { %v2445_v11 = vmin.f32 %v2413_v22, 6.0 }
 0x253   : > { %v2438_v23 = vmin.f32 %v2406_v6, 6.0 }
 0x255   : > { %v2979_v28 = vpack.c.bf16 %v2438_v23, %v2437_v19  ;;  %v2380_v51 = vpop.f32.mrf.mxu3 }
 0x256   : > { %v2381_v21 = vadd.f32 %v4417_v13, %v2380_v51 }
 0x257   : > { %3106 = vst [vmem:[%s4432_s20 + $0x58] sm:$0xff] %v2979_v28  }
 0x258   : > { %v2414_v26 = vmax.f32 %v2381_v21, 0.0 }
 0x25a   : > { %v2446_v47 = vmin.f32 %v2414_v26, 6.0 }
 0x25c   : > { %v2999_v38 = vpack.c.bf16 %v2446_v47, %v2445_v11 }
 0x25e   : > { %v2338_v16 = vpop.f32.mrf.mxu1  ;;  %3110 = vst [vmem:[%s4432_s20 + $0x78] sm:$0xff] %v2999_v38  }
 0x25f   : > { %v2318_v36 = vpop.f32.mrf.mxu0  ;;  %v2339_v43 = vadd.f32 %v4417_v13, %v2338_v16 }
 0x260   : > { %v2319_v63 = vadd.f32 %v4417_v13, %v2318_v36 }
 0x261   : > { %v2397_v12 = vmax.f32 %v2339_v43, 0.0 }
 0x262   : > { %v2389_v18 = vmax.f32 %v2319_v63, 0.0 }
 0x263   : > { %v2429_v58 = vmin.f32 %v2397_v12, 6.0 }
 0x264   : > { %v2421_v34 = vmin.f32 %v2389_v18, 6.0 }
 0x266   : > { %v2340_v24 = vpop.f32.mrf.mxu1 }
 0x267   : > { %v2341_v15 = vadd.f32 %v4417_v13, %v2340_v24  ;;  %v2320_v0 = vpop.f32.mrf.mxu0 }
 0x268   : > { %v2321_v57 = vadd.f32 %v4417_v13, %v2320_v0 }
 0x269   : > { %v2398_v53 = vmax.f32 %v2341_v15, 0.0 }
 0x26a   : > { %v2390_v17 = vmax.f32 %v2321_v57, 0.0 }
 0x26b   : > { %v2430_v8 = vmin.f32 %v2398_v53, 6.0 }
 0x26c   : > { %v2422_v45 = vmin.f32 %v2390_v17, 6.0 }
 0x26d   : > { %v2959_v4 = vpack.c.bf16 %v2430_v8, %v2429_v58 }
 0x26e   : > { %v2939_v50 = vpack.c.bf16 %v2422_v45, %v2421_v34 }
 0x26f   : > { %3102 = vst [vmem:[%s4432_s20 + $0x38] sm:$0xff] %v2959_v4  }
 0x270   : > { %3098 = vst [vmem:[%s4432_s20 + $0x18] sm:$0xff] %v2939_v50  }
 0x271 PF: > { %s13_s14 = sadd.s32 1, %s3259_s14   ;;  %s4526_s12 = smov %s3255_s13 }
 0x272   : > { %p10_p5 = scmp.ge.s32.totalorder %s13_s14, 4   ;;  %s4527_s13 = smov %s4529_s15 }
 0x274   :  { %12 = sbr.rel (!%p10_p5) target bundleno = 2 (0x2), region = 71 }

</bundles_post_ra>
